<compile_context>
chip_gen: v5e
topology: v5e:2x2
jax: 0.10.0
libtpu: 0.0.40
codegen_flags: <defaults>
</compile_context>

<pallas_src>
import functools

import numpy as np
import jax
import jax.numpy as jnp
from jax.experimental import pallas as pl
from jax.experimental.pallas import tpu as pltpu


# ----------------------------------------------------------------------------
# helpers
# ----------------------------------------------------------------------------

def _round_up(n, m):
    return ((n + m - 1) // m) * m


def _pick_lane_tile(n_pad, cap=8192):
    """Largest power-of-two lane tile (>=128, <=cap) dividing n_pad (a multiple
    of 128), so tiling never silently falls back to an untiled block."""
    for cand in (8192, 4096, 2048, 1024, 512, 256, 128):
        if cand <= cap and n_pad % cand == 0:
            return cand
    return 128  # unreachable: n_pad is a multiple of 128


@functools.lru_cache(maxsize=None)
def _vmem_limit():
    # Generation-aware VMEM budget: half of physical, capped at 48 MiB (fits
    # v7x's 64 MiB per-core VMEM; v5e/v6e have 128 MiB).
    try:
        cap = pltpu.get_tpu_info().vmem_capacity_bytes
    except Exception:
        cap = 96 * 1024 * 1024
    return int(min(48 * 1024 * 1024, max(16 * 1024 * 1024, cap // 2)))


# ----------------------------------------------------------------------------
# 1x1 conv as a lane-dense transposed GEMM (used for expand_feature)
# ----------------------------------------------------------------------------

def _conv1x1_kernel(x_ref, w_ref, b_ref, o_ref):
    # x: (1, Cin, T) bf16, w: (Cout, Cin) bf16, b: (Cout, 1) f32
    y = jnp.dot(w_ref[...], x_ref[0], preferred_element_type=jnp.float32)
    o_ref[0] = (y + b_ref[...]).astype(o_ref.dtype)


def conv1x1_nchw(x_nchw, w, b):
    """1x1 conv in NCHW: out[b] = w @ x[b] + b, spatial flattened on lanes."""
    bsz, cin, h, wdt = x_nchw.shape
    cout = w.shape[0]
    hw = h * wdt
    hw_pad = _round_up(hw, 128)
    xf = x_nchw.reshape(bsz, cin, hw).astype(jnp.bfloat16)   # bf16 pre-cast
    if hw_pad != hw:
        xf = jnp.pad(xf, ((0, 0), (0, 0), (0, hw_pad - hw)))
    tile = _pick_lane_tile(hw_pad)
    n_t = hw_pad // tile
    out = pl.pallas_call(
        _conv1x1_kernel,
        grid=(bsz, n_t),
        in_specs=[
            pl.BlockSpec((1, cin, tile), lambda bi, ti: (bi, 0, ti)),
            pl.BlockSpec((cout, cin), lambda bi, ti: (0, 0)),
            pl.BlockSpec((cout, 1), lambda bi, ti: (0, 0)),
        ],
        out_specs=pl.BlockSpec((1, cout, tile), lambda bi, ti: (bi, 0, ti)),
        out_shape=jax.ShapeDtypeStruct((bsz, cout, hw_pad), jnp.float32),
        compiler_params=pltpu.CompilerParams(
            dimension_semantics=("parallel", "parallel"),
            vmem_limit_bytes=_vmem_limit()),
    )(xf, w.astype(jnp.bfloat16), b.reshape(cout, 1).astype(jnp.float32))
    return out[:, :, :hw].reshape(bsz, cout, h, wdt)


# ----------------------------------------------------------------------------
# Fused reduce_feature (1x1) + grad_filter branch
#   3x conv3x3 [+LeakyReLU 0.1]  ->  adaptive 3x3 avg-pool  ->  1x1 conv
#   -> exp -> spatial-mean subtraction, all in one per-batch kernel.
# ----------------------------------------------------------------------------

def _reduce_gradfilter_kernel(x_ref, rw_ref, rb_ref,
                              w1_ref, b1_ref, w2_ref, b2_ref,
                              w3_ref, b3_ref, w4_ref, b4_ref,
                              pool_ref, cls_ref, kp_ref, *, C, W, HW):
    # reduce_feature: (C, nf) @ (nf, HW) on the MXU (bf16 in, f32 accumulate).
    cls = jnp.dot(rw_ref[...], x_ref[0],
                  preferred_element_type=jnp.float32) + rb_ref[...]
    cls_ref[0] = cls                                           # (C, HW), lane-dense

    def conv3x3(feat, length, w9_ref, b_ref, leaky):
        # feat: (C, length) f32, flattened spatial with row stride W.
        # Tap (dy, dx) is a lane shift of dy*W + dx; positions that straddle a
        # row boundary are garbage but never feed valid outputs (the pooling
        # matrix zeroes them).
        l_out = length - 2 * W - 2
        acc = None
        for dy in range(3):
            for dx in range(3):
                s = dy * W + dx
                t = jnp.dot(w9_ref[dy * 3 + dx], feat[:, s:s + l_out],
                            preferred_element_type=jnp.float32)
                acc = t if acc is None else acc + t
        acc = acc + b_ref[...]
        if leaky:
            acc = jnp.where(acc >= 0.0, acc, 0.1 * acc)
        return acc, l_out

    feat, l = conv3x3(cls, HW, w1_ref, b1_ref, True)
    feat, l = conv3x3(feat, l, w2_ref, b2_ref, True)
    feat, l = conv3x3(feat, l, w3_ref, b3_ref, False)

    # AdaptiveAvgPool2d((3,3)): one (C, L3) @ (L3, 9) matmul (window weights
    # and the stride-W valid-region mask baked into pool_ref).
    pooled = jnp.dot(feat, pool_ref[...], preferred_element_type=jnp.float32)  # (C, 9)

    # 1x1 conv head + exp + subtract mean over the 3x3 spatial positions.
    head = jnp.dot(w4_ref[...], pooled,
                   preferred_element_type=jnp.float32) + b4_ref[...]
    e = jnp.exp(head)
    kp_ref[0] = e - jnp.mean(e, axis=1, keepdims=True)


def _pool_matrix(h, w):
    """(L3, 9) matrix: adaptive-avg-pool window weights for the valid (hv, wv)
    region of the flattened (row stride w) conv3 output; garbage lanes -> 0."""
    hv, wv = h - 6, w - 6
    l3 = h * w - 3 * (2 * w + 2)
    p = np.zeros((l3, 9), np.float32)
    for oi in range(3):
        hs, he = (oi * hv) // 3, -(-((oi + 1) * hv) // 3)
        for oj in range(3):
            ws, we = (oj * wv) // 3, -(-((oj + 1) * wv) // 3)
            val = 1.0 / ((he - hs) * (we - ws))
            for y in range(hs, he):
                for x in range(ws, we):
                    p[y * w + x, oi * 3 + oj] = val
    return jnp.asarray(p)


def reduce_and_grad_filter(x_nchw, params):
    bsz, nf, h, w = x_nchw.shape
    c = params['reduce_w'].shape[0]
    assert h >= 7 and w >= 7, "spatial size too small for three 3x3 convs"
    hw = h * w
    l3 = hw - 3 * (2 * w + 2)
    pmat = _pool_matrix(h, w)

    def prep3(wt):  # (Cout, Cin, 3, 3) -> (9, Cout, Cin), tap-major
        return jnp.transpose(wt, (2, 3, 0, 1)).reshape(9, c, c).astype(jnp.float32)

    def colb(bv):
        return bv.reshape(-1, 1).astype(jnp.float32)

    def vspec(shape):
        return pl.BlockSpec(shape, lambda b, _s=len(shape): (0,) * _s)

    cls_flat, kp = pl.pallas_call(
        functools.partial(_reduce_gradfilter_kernel, C=c, W=w, HW=hw),
        grid=(bsz,),
        in_specs=[
            pl.BlockSpec((1, nf, hw), lambda b: (b, 0, 0)),
            vspec((c, nf)), vspec((c, 1)),
            vspec((9, c, c)), vspec((c, 1)),
            vspec((9, c, c)), vspec((c, 1)),
            vspec((9, c, c)), vspec((c, 1)),
            vspec((c, c)), vspec((c, 1)),
            vspec((l3, 9)),
        ],
        out_specs=(pl.BlockSpec((1, c, hw), lambda b: (b, 0, 0)),
                   pl.BlockSpec((1, c, 9), lambda b: (b, 0, 0))),
        out_shape=(jax.ShapeDtypeStruct((bsz, c, hw), jnp.float32),
                   jax.ShapeDtypeStruct((bsz, c, 9), jnp.float32)),
        compiler_params=pltpu.CompilerParams(
            dimension_semantics=("parallel",),
            vmem_limit_bytes=_vmem_limit()),
    )(x_nchw.reshape(bsz, nf, hw).astype(jnp.bfloat16),
      params['reduce_w'].astype(jnp.bfloat16), colb(params['reduce_b']),
      prep3(params['g1_w']), colb(params['g1_b']),
      prep3(params['g2_w']), colb(params['g2_b']),
      prep3(params['g3_w']), colb(params['g3_b']),
      params['g4_w'].astype(jnp.float32), colb(params['g4_b']),
      pmat)
    return cls_flat.reshape(bsz, c, h, w), kp.reshape(bsz, c, 3, 3)


# ----------------------------------------------------------------------------
# Wiener deconvolution (elementwise FFT-domain hot path), lane-tiled
# ----------------------------------------------------------------------------

def _wiener_kernel(kfr_ref, kfi_ref, kpr_ref, kpi_ref, nr_ref, ni_ref,
                   dr_ref, di_ref):
    """inv_fft_kernel_est + deconv complex multiply.  ker_f is (1, T) and is
    broadcast over the C channels in-kernel (never materialized in HBM)."""
    kfr = kfr_ref[0]                  # (1, T)
    kfi = kfi_ref[0]
    kpr = kpr_ref[0]                  # (C, T)
    kpi = kpi_ref[0]
    nr = nr_ref[0]
    ni = ni_ref[0]
    # NOTE: no epsilon in the denominator, to match the reference exactly.
    denom = kfr * kfr + kfi * kfi + kpr * kpr + kpi * kpi
    inv = pl.reciprocal(denom)        # exact; one divide instead of two
    ikr = kfr * inv
    iki = -(kfi * inv)
    dr_ref[0] = ikr * nr - iki * ni
    di_ref[0] = ikr * ni + iki * nr


def pallas_wiener(kfr, kfi, kpr, kpi, nr, ni):
    bsz, c, n = nr.shape
    n_pad = _round_up(n, 128)
    if n_pad != n:
        pad = ((0, 0), (0, 0), (0, n_pad - n))
        kfr = jnp.pad(kfr, pad, constant_values=1.0)   # keep denom > 0 in pad
        kfi = jnp.pad(kfi, pad)
        kpr = jnp.pad(kpr, pad)
        kpi = jnp.pad(kpi, pad)
        nr = jnp.pad(nr, pad)
        ni = jnp.pad(ni, pad)
    tile = _pick_lane_tile(n_pad)
    n_t = n_pad // tile
    spec_k = pl.BlockSpec((1, 1, tile), lambda b, t: (b, 0, t))
    spec_c = pl.BlockSpec((1, c, tile), lambda b, t: (b, 0, t))
    dr, di = pl.pallas_call(
        _wiener_kernel,
        grid=(bsz, n_t),
        in_specs=[spec_k, spec_k, spec_c, spec_c, spec_c, spec_c],
        out_specs=(spec_c, spec_c),
        out_shape=(jax.ShapeDtypeStruct((bsz, c, n_pad), jnp.float32),
                   jax.ShapeDtypeStruct((bsz, c, n_pad), jnp.float32)),
        compiler_params=pltpu.CompilerParams(
            dimension_semantics=("parallel", "parallel"),
            vmem_limit_bytes=_vmem_limit()),
    )(kfr, kfi, kpr, kpi, nr, ni)
    return dr[:, :, :n], di[:, :, :n]


# ----------------------------------------------------------------------------
# XLA glue: psf->otf placement, replicate pad, FFTs
# ----------------------------------------------------------------------------

def psf_shift(ker, hp, wp):
    """convert_psf2otf placement (circular shift of kernel centre to (0,0))."""
    ks = ker.shape[-1]
    assert ks % 2 == 1, "psf->otf placement assumes an odd kernel size"
    centre = ks // 2 + 1
    bsz, c = ker.shape[0], ker.shape[1]
    psf = jnp.zeros((bsz, c, hp, wp), ker.dtype)
    psf = psf.at[:, :, :centre, :centre].set(ker[:, :, centre - 1:, centre - 1:])
    psf = psf.at[:, :, :centre, wp - (centre - 1):].set(ker[:, :, centre - 1:, :centre - 1])
    psf = psf.at[:, :, hp - (centre - 1):, :centre].set(ker[:, :, :centre - 1, centre - 1:])
    psf = psf.at[:, :, hp - (centre - 1):, wp - (centre - 1):].set(ker[:, :, :centre - 1, :centre - 1])
    return psf


# ----------------------------------------------------------------------------
# CLS forward
# ----------------------------------------------------------------------------

def cls_forward(params, x_nchw, blur_kernel):
    bsz, nf, h, w = x_nchw.shape
    c = params['reduce_w'].shape[0]
    ks = blur_kernel.shape[-1]

    # reduce_feature (1x1 conv) fused with the grad_filter branch:
    # one kernel launch emits cls_feats and kernel_P.
    cls_feats, kernel_p = reduce_and_grad_filter(x_nchw, params)

    # FFT-domain Wiener deconvolution, vectorised over the channel loop.  The
    # original 3-D FFT over dims (-3,-2,-1) is an identity over the singleton
    # channel dim, i.e. a 2-D spatial FFT.
    feature_pad = jnp.pad(cls_feats, ((0, 0), (0, 0), (ks, ks), (ks, ks)),
                          mode='edge')                       # replicate pad
    hp, wp = h + 2 * ks, w + 2 * ks
    psf_k = psf_shift(blur_kernel, hp, wp)                   # (B, 1, Hp, Wp)
    psf_p = psf_shift(kernel_p, hp, wp)                      # (B, C, Hp, Wp)
    # TODO(synk): FFT/IFFT have no Pallas primitive; computed with jnp.fft (XLA).
    ker_f = jnp.fft.fft2(psf_k)
    ker_p = jnp.fft.fft2(psf_p)
    num = jnp.fft.fft2(feature_pad)

    n = hp * wp
    dr, di = pallas_wiener(
        jnp.real(ker_f).astype(jnp.float32).reshape(bsz, 1, n),
        jnp.imag(ker_f).astype(jnp.float32).reshape(bsz, 1, n),
        jnp.real(ker_p).astype(jnp.float32).reshape(bsz, c, n),
        jnp.imag(ker_p).astype(jnp.float32).reshape(bsz, c, n),
        jnp.real(num).astype(jnp.float32).reshape(bsz, c, n),
        jnp.imag(num).astype(jnp.float32).reshape(bsz, c, n))
    deblur = jnp.real(jnp.fft.ifft2((dr + 1j * di).reshape(bsz, c, hp, wp)))
    clear = deblur[:, :, ks:-ks, ks:-ks]                     # (B, C, H, W)

    # expand_feature (1x1 conv)
    return conv1x1_nchw(clear, params['expand_w'], params['expand_b'])


# ----------------------------------------------------------------------------
# Main
# ----------------------------------------------------------------------------

if __name__ == "__main__":
    key = jax.random.PRNGKey(0)
    B, nf, H, W = 2, 16, 16, 16
    reduction = 4
    C = nf // reduction
    ks = 5

    keys = jax.random.split(key, 16)

    def w_init(k, shape, scale=0.1):
        return jax.random.normal(k, shape, jnp.float32) * scale

    # Synthetic parameters in PyTorch layouts:
    #   1x1 conv -> (Cout, Cin); 3x3 conv -> (Cout, Cin, kh, kw).
    params = {
        'reduce_w': w_init(keys[0], (C, nf)),
        'reduce_b': w_init(keys[1], (C,)),
        'g1_w': w_init(keys[2], (C, C, 3, 3)),
        'g1_b': w_init(keys[3], (C,)),
        'g2_w': w_init(keys[4], (C, C, 3, 3)),
        'g2_b': w_init(keys[5], (C,)),
        'g3_w': w_init(keys[6], (C, C, 3, 3)),
        'g3_b': w_init(keys[7], (C,)),
        'g4_w': w_init(keys[8], (C, C)),
        'g4_b': w_init(keys[9], (C,)),
        'expand_w': w_init(keys[10], (nf, C)),
        'expand_b': w_init(keys[11], (nf,)),
    }

    x = jax.random.normal(keys[12], (B, nf, H, W), jnp.float32)
    blur = jax.random.uniform(keys[13], (B, 1, ks, ks), jnp.float32)
    blur = blur / jnp.sum(blur, axis=(-2, -1), keepdims=True)  # normalized blur

    out = jax.jit(cls_forward)(params, x, blur)
    out = jax.block_until_ready(out)

    assert out.shape == (B, nf, H, W), out.shape
    assert bool(jnp.all(jnp.isfinite(out)))
    print("KERNEL_OK")
</pallas_src>

<mosaic_0001>
module attributes {stable_mosaic.version = 11 : i64} {
  func.func @_reduce_gradfilter_kernel(%arg0: i32, %arg1: memref<1x16x256xbf16, #tpu.memory_space<vmem>>, %arg2: memref<4x16xbf16, #tpu.memory_space<vmem>>, %arg3: memref<4x1xf32, #tpu.memory_space<vmem>>, %arg4: memref<9x4x4xf32, #tpu.memory_space<vmem>>, %arg5: memref<4x1xf32, #tpu.memory_space<vmem>>, %arg6: memref<9x4x4xf32, #tpu.memory_space<vmem>>, %arg7: memref<4x1xf32, #tpu.memory_space<vmem>>, %arg8: memref<9x4x4xf32, #tpu.memory_space<vmem>>, %arg9: memref<4x1xf32, #tpu.memory_space<vmem>>, %arg10: memref<4x4xf32, #tpu.memory_space<vmem>>, %arg11: memref<4x1xf32, #tpu.memory_space<vmem>>, %arg12: memref<154x9xf32, #tpu.memory_space<vmem>>, %arg13: memref<1x4x256xf32, #tpu.memory_space<vmem>>, %arg14: memref<1x4x9xf32, #tpu.memory_space<vmem>>) attributes {dimension_semantics = [#tpu.dimension_semantics<parallel>], iteration_bounds = array<i64: 2>, scalar_prefetch = 0 : i64, scratch_operands = 0 : i64, tpu.core_type = #tpu.core_type<tc>, window_params = [{transform_indices = @transform_0, window_bounds = array<i64: 1, 16, 256>}, {pipeline_mode = #tpu.pipeline_mode<synchronous>, transform_indices = @transform_1, window_bounds = array<i64: 4, 16>}, {pipeline_mode = #tpu.pipeline_mode<synchronous>, transform_indices = @transform_2, window_bounds = array<i64: 4, 1>}, {pipeline_mode = #tpu.pipeline_mode<synchronous>, transform_indices = @transform_3, window_bounds = array<i64: 9, 4, 4>}, {pipeline_mode = #tpu.pipeline_mode<synchronous>, transform_indices = @transform_4, window_bounds = array<i64: 4, 1>}, {pipeline_mode = #tpu.pipeline_mode<synchronous>, transform_indices = @transform_5, window_bounds = array<i64: 9, 4, 4>}, {pipeline_mode = #tpu.pipeline_mode<synchronous>, transform_indices = @transform_6, window_bounds = array<i64: 4, 1>}, {pipeline_mode = #tpu.pipeline_mode<synchronous>, transform_indices = @transform_7, window_bounds = array<i64: 9, 4, 4>}, {pipeline_mode = #tpu.pipeline_mode<synchronous>, transform_indices = @transform_8, window_bounds = array<i64: 4, 1>}, {pipeline_mode = #tpu.pipeline_mode<synchronous>, transform_indices = @transform_9, window_bounds = array<i64: 4, 4>}, {pipeline_mode = #tpu.pipeline_mode<synchronous>, transform_indices = @transform_10, window_bounds = array<i64: 4, 1>}, {pipeline_mode = #tpu.pipeline_mode<synchronous>, transform_indices = @transform_11, window_bounds = array<i64: 154, 9>}, {transform_indices = @transform_12, window_bounds = array<i64: 1, 4, 256>}, {transform_indices = @transform_13, window_bounds = array<i64: 1, 4, 9>}]} {
    %c0 = arith.constant 0 : index
    %c0_0 = arith.constant 0 : index
    %0 = vector.load %arg2[%c0, %c0_0] : memref<4x16xbf16, #tpu.memory_space<vmem>>, vector<4x16xbf16>
    %c0_1 = arith.constant 0 : index
    %c0_2 = arith.constant 0 : index
    %c0_3 = arith.constant 0 : index
    %1 = vector.load %arg1[%c0_1, %c0_2, %c0_3] : memref<1x16x256xbf16, #tpu.memory_space<vmem>>, vector<1x16x256xbf16>
    %2 = vector.shape_cast %1 : vector<1x16x256xbf16> to vector<16x256xbf16>
    %cst = arith.constant dense<0.000000e+00> : vector<4x256xf32>
    %3 = tpu.matmul %0, %2, %cst {dimension_numbers = #tpu.dot_dimension_numbers<[1], [0], [0], [1], [0, 0, 1, 1], [], []>} : vector<4x16xbf16>, vector<16x256xbf16>, vector<4x256xf32> -> vector<4x256xf32>
    %c0_4 = arith.constant 0 : index
    %c0_5 = arith.constant 0 : index
    %4 = vector.load %arg3[%c0_4, %c0_5] : memref<4x1xf32, #tpu.memory_space<vmem>>, vector<4x1xf32>
    %5 = vector.broadcast %4 : vector<4x1xf32> to vector<4x256xf32>
    %6 = arith.addf %3, %5 : vector<4x256xf32>
    %c0_6 = arith.constant 0 : index
    %c0_7 = arith.constant 0 : index
    %c0_8 = arith.constant 0 : index
    %7 = vector.load %arg13[%c0_6, %c0_7, %c0_8] : memref<1x4x256xf32, #tpu.memory_space<vmem>>, vector<1x4x256xf32>
    %8 = vector.shape_cast %7 : vector<1x4x256xf32> to vector<4x256xf32>
    %9 = vector.shape_cast %6 : vector<4x256xf32> to vector<1x4x256xf32>
    tpu.vector_store %arg13[%c0_6, %c0_7, %c0_8], %9 {strides = array<i32>} : memref<1x4x256xf32, #tpu.memory_space<vmem>>, vector<1x4x256xf32>,
    %c0_9 = arith.constant 0 : index
    %c0_10 = arith.constant 0 : index
    %c0_11 = arith.constant 0 : index
    %10 = vector.load %arg4[%c0_9, %c0_10, %c0_11] : memref<9x4x4xf32, #tpu.memory_space<vmem>>, vector<1x4x4xf32>
    %11 = vector.shape_cast %10 : vector<1x4x4xf32> to vector<4x4xf32>
    %12 = vector.extract_strided_slice %6 {offsets = [0, 0], sizes = [4, 222], strides = [1, 1]} : vector<4x256xf32> to vector<4x222xf32>
    %cst_12 = arith.constant dense<0.000000e+00> : vector<4x222xf32>
    %13 = tpu.matmul %11, %12, %cst_12 {dimension_numbers = #tpu.dot_dimension_numbers<[1], [0], [0], [1], [0, 0, 1, 1], [], []>} : vector<4x4xf32>, vector<4x222xf32>, vector<4x222xf32> -> vector<4x222xf32>
    %c1 = arith.constant 1 : index
    %c0_13 = arith.constant 0 : index
    %c0_14 = arith.constant 0 : index
    %14 = vector.load %arg4[%c1, %c0_13, %c0_14] : memref<9x4x4xf32, #tpu.memory_space<vmem>>, vector<1x4x4xf32>
    %15 = vector.shape_cast %14 : vector<1x4x4xf32> to vector<4x4xf32>
    %16 = vector.extract_strided_slice %6 {offsets = [0, 1], sizes = [4, 222], strides = [1, 1]} : vector<4x256xf32> to vector<4x222xf32>
    %cst_15 = arith.constant dense<0.000000e+00> : vector<4x222xf32>
    %17 = tpu.matmul %15, %16, %cst_15 {dimension_numbers = #tpu.dot_dimension_numbers<[1], [0], [0], [1], [0, 0, 1, 1], [], []>} : vector<4x4xf32>, vector<4x222xf32>, vector<4x222xf32> -> vector<4x222xf32>
    %18 = arith.addf %13, %17 : vector<4x222xf32>
    %c2 = arith.constant 2 : index
    %c0_16 = arith.constant 0 : index
    %c0_17 = arith.constant 0 : index
    %19 = vector.load %arg4[%c2, %c0_16, %c0_17] : memref<9x4x4xf32, #tpu.memory_space<vmem>>, vector<1x4x4xf32>
    %20 = vector.shape_cast %19 : vector<1x4x4xf32> to vector<4x4xf32>
    %21 = vector.extract_strided_slice %6 {offsets = [0, 2], sizes = [4, 222], strides = [1, 1]} : vector<4x256xf32> to vector<4x222xf32>
    %cst_18 = arith.constant dense<0.000000e+00> : vector<4x222xf32>
    %22 = tpu.matmul %20, %21, %cst_18 {dimension_numbers = #tpu.dot_dimension_numbers<[1], [0], [0], [1], [0, 0, 1, 1], [], []>} : vector<4x4xf32>, vector<4x222xf32>, vector<4x222xf32> -> vector<4x222xf32>
    %23 = arith.addf %18, %22 : vector<4x222xf32>
    %c3 = arith.constant 3 : index
    %c0_19 = arith.constant 0 : index
    %c0_20 = arith.constant 0 : index
    %24 = vector.load %arg4[%c3, %c0_19, %c0_20] : memref<9x4x4xf32, #tpu.memory_space<vmem>>, vector<1x4x4xf32>
    %25 = vector.shape_cast %24 : vector<1x4x4xf32> to vector<4x4xf32>
    %26 = vector.extract_strided_slice %6 {offsets = [0, 16], sizes = [4, 222], strides = [1, 1]} : vector<4x256xf32> to vector<4x222xf32>
    %cst_21 = arith.constant dense<0.000000e+00> : vector<4x222xf32>
    %27 = tpu.matmul %25, %26, %cst_21 {dimension_numbers = #tpu.dot_dimension_numbers<[1], [0], [0], [1], [0, 0, 1, 1], [], []>} : vector<4x4xf32>, vector<4x222xf32>, vector<4x222xf32> -> vector<4x222xf32>
    %28 = arith.addf %23, %27 : vector<4x222xf32>
    %c4 = arith.constant 4 : index
    %c0_22 = arith.constant 0 : index
    %c0_23 = arith.constant 0 : index
    %29 = vector.load %arg4[%c4, %c0_22, %c0_23] : memref<9x4x4xf32, #tpu.memory_space<vmem>>, vector<1x4x4xf32>
    %30 = vector.shape_cast %29 : vector<1x4x4xf32> to vector<4x4xf32>
    %31 = vector.extract_strided_slice %6 {offsets = [0, 17], sizes = [4, 222], strides = [1, 1]} : vector<4x256xf32> to vector<4x222xf32>
    %cst_24 = arith.constant dense<0.000000e+00> : vector<4x222xf32>
    %32 = tpu.matmul %30, %31, %cst_24 {dimension_numbers = #tpu.dot_dimension_numbers<[1], [0], [0], [1], [0, 0, 1, 1], [], []>} : vector<4x4xf32>, vector<4x222xf32>, vector<4x222xf32> -> vector<4x222xf32>
    %33 = arith.addf %28, %32 : vector<4x222xf32>
    %c5 = arith.constant 5 : index
    %c0_25 = arith.constant 0 : index
    %c0_26 = arith.constant 0 : index
    %34 = vector.load %arg4[%c5, %c0_25, %c0_26] : memref<9x4x4xf32, #tpu.memory_space<vmem>>, vector<1x4x4xf32>
    %35 = vector.shape_cast %34 : vector<1x4x4xf32> to vector<4x4xf32>
    %36 = vector.extract_strided_slice %6 {offsets = [0, 18], sizes = [4, 222], strides = [1, 1]} : vector<4x256xf32> to vector<4x222xf32>
    %cst_27 = arith.constant dense<0.000000e+00> : vector<4x222xf32>
    %37 = tpu.matmul %35, %36, %cst_27 {dimension_numbers = #tpu.dot_dimension_numbers<[1], [0], [0], [1], [0, 0, 1, 1], [], []>} : vector<4x4xf32>, vector<4x222xf32>, vector<4x222xf32> -> vector<4x222xf32>
    %38 = arith.addf %33, %37 : vector<4x222xf32>
    %c6 = arith.constant 6 : index
    %c0_28 = arith.constant 0 : index
    %c0_29 = arith.constant 0 : index
    %39 = vector.load %arg4[%c6, %c0_28, %c0_29] : memref<9x4x4xf32, #tpu.memory_space<vmem>>, vector<1x4x4xf32>
    %40 = vector.shape_cast %39 : vector<1x4x4xf32> to vector<4x4xf32>
    %41 = vector.extract_strided_slice %6 {offsets = [0, 32], sizes = [4, 222], strides = [1, 1]} : vector<4x256xf32> to vector<4x222xf32>
    %cst_30 = arith.constant dense<0.000000e+00> : vector<4x222xf32>
    %42 = tpu.matmul %40, %41, %cst_30 {dimension_numbers = #tpu.dot_dimension_numbers<[1], [0], [0], [1], [0, 0, 1, 1], [], []>} : vector<4x4xf32>, vector<4x222xf32>, vector<4x222xf32> -> vector<4x222xf32>
    %43 = arith.addf %38, %42 : vector<4x222xf32>
    %c7 = arith.constant 7 : index
    %c0_31 = arith.constant 0 : index
    %c0_32 = arith.constant 0 : index
    %44 = vector.load %arg4[%c7, %c0_31, %c0_32] : memref<9x4x4xf32, #tpu.memory_space<vmem>>, vector<1x4x4xf32>
    %45 = vector.shape_cast %44 : vector<1x4x4xf32> to vector<4x4xf32>
    %46 = vector.extract_strided_slice %6 {offsets = [0, 33], sizes = [4, 222], strides = [1, 1]} : vector<4x256xf32> to vector<4x222xf32>
    %cst_33 = arith.constant dense<0.000000e+00> : vector<4x222xf32>
    %47 = tpu.matmul %45, %46, %cst_33 {dimension_numbers = #tpu.dot_dimension_numbers<[1], [0], [0], [1], [0, 0, 1, 1], [], []>} : vector<4x4xf32>, vector<4x222xf32>, vector<4x222xf32> -> vector<4x222xf32>
    %48 = arith.addf %43, %47 : vector<4x222xf32>
    %c8 = arith.constant 8 : index
    %c0_34 = arith.constant 0 : index
    %c0_35 = arith.constant 0 : index
    %49 = vector.load %arg4[%c8, %c0_34, %c0_35] : memref<9x4x4xf32, #tpu.memory_space<vmem>>, vector<1x4x4xf32>
    %50 = vector.shape_cast %49 : vector<1x4x4xf32> to vector<4x4xf32>
    %51 = vector.extract_strided_slice %6 {offsets = [0, 34], sizes = [4, 222], strides = [1, 1]} : vector<4x256xf32> to vector<4x222xf32>
    %cst_36 = arith.constant dense<0.000000e+00> : vector<4x222xf32>
    %52 = tpu.matmul %50, %51, %cst_36 {dimension_numbers = #tpu.dot_dimension_numbers<[1], [0], [0], [1], [0, 0, 1, 1], [], []>} : vector<4x4xf32>, vector<4x222xf32>, vector<4x222xf32> -> vector<4x222xf32>
    %53 = arith.addf %48, %52 : vector<4x222xf32>
    %c0_37 = arith.constant 0 : index
    %c0_38 = arith.constant 0 : index
    %54 = vector.load %arg5[%c0_37, %c0_38] : memref<4x1xf32, #tpu.memory_space<vmem>>, vector<4x1xf32>
    %55 = vector.broadcast %54 : vector<4x1xf32> to vector<4x222xf32>
    %56 = arith.addf %53, %55 : vector<4x222xf32>
    %cst_39 = arith.constant 0.000000e+00 : f32
    %57 = vector.broadcast %cst_39 : f32 to vector<4x222xf32>
    %58 = arith.cmpf oge, %56, %57 : vector<4x222xf32>
    %cst_40 = arith.constant 1.000000e-01 : f32
    %59 = vector.broadcast %cst_40 : f32 to vector<4x222xf32>
    %60 = arith.mulf %59, %56 : vector<4x222xf32>
    %61 = arith.select %58, %56, %60 : vector<4x222xi1>, vector<4x222xf32>
    %c0_41 = arith.constant 0 : index
    %c0_42 = arith.constant 0 : index
    %c0_43 = arith.constant 0 : index
    %62 = vector.load %arg6[%c0_41, %c0_42, %c0_43] : memref<9x4x4xf32, #tpu.memory_space<vmem>>, vector<1x4x4xf32>
    %63 = vector.shape_cast %62 : vector<1x4x4xf32> to vector<4x4xf32>
    %64 = vector.extract_strided_slice %61 {offsets = [0, 0], sizes = [4, 188], strides = [1, 1]} : vector<4x222xf32> to vector<4x188xf32>
    %cst_44 = arith.constant dense<0.000000e+00> : vector<4x188xf32>
    %65 = tpu.matmul %63, %64, %cst_44 {dimension_numbers = #tpu.dot_dimension_numbers<[1], [0], [0], [1], [0, 0, 1, 1], [], []>} : vector<4x4xf32>, vector<4x188xf32>, vector<4x188xf32> -> vector<4x188xf32>
    %c1_45 = arith.constant 1 : index
    %c0_46 = arith.constant 0 : index
    %c0_47 = arith.constant 0 : index
    %66 = vector.load %arg6[%c1_45, %c0_46, %c0_47] : memref<9x4x4xf32, #tpu.memory_space<vmem>>, vector<1x4x4xf32>
    %67 = vector.shape_cast %66 : vector<1x4x4xf32> to vector<4x4xf32>
    %68 = vector.extract_strided_slice %61 {offsets = [0, 1], sizes = [4, 188], strides = [1, 1]} : vector<4x222xf32> to vector<4x188xf32>
    %cst_48 = arith.constant dense<0.000000e+00> : vector<4x188xf32>
    %69 = tpu.matmul %67, %68, %cst_48 {dimension_numbers = #tpu.dot_dimension_numbers<[1], [0], [0], [1], [0, 0, 1, 1], [], []>} : vector<4x4xf32>, vector<4x188xf32>, vector<4x188xf32> -> vector<4x188xf32>
    %70 = arith.addf %65, %69 : vector<4x188xf32>
    %c2_49 = arith.constant 2 : index
    %c0_50 = arith.constant 0 : index
    %c0_51 = arith.constant 0 : index
    %71 = vector.load %arg6[%c2_49, %c0_50, %c0_51] : memref<9x4x4xf32, #tpu.memory_space<vmem>>, vector<1x4x4xf32>
    %72 = vector.shape_cast %71 : vector<1x4x4xf32> to vector<4x4xf32>
    %73 = vector.extract_strided_slice %61 {offsets = [0, 2], sizes = [4, 188], strides = [1, 1]} : vector<4x222xf32> to vector<4x188xf32>
    %cst_52 = arith.constant dense<0.000000e+00> : vector<4x188xf32>
    %74 = tpu.matmul %72, %73, %cst_52 {dimension_numbers = #tpu.dot_dimension_numbers<[1], [0], [0], [1], [0, 0, 1, 1], [], []>} : vector<4x4xf32>, vector<4x188xf32>, vector<4x188xf32> -> vector<4x188xf32>
    %75 = arith.addf %70, %74 : vector<4x188xf32>
    %c3_53 = arith.constant 3 : index
    %c0_54 = arith.constant 0 : index
    %c0_55 = arith.constant 0 : index
    %76 = vector.load %arg6[%c3_53, %c0_54, %c0_55] : memref<9x4x4xf32, #tpu.memory_space<vmem>>, vector<1x4x4xf32>
    %77 = vector.shape_cast %76 : vector<1x4x4xf32> to vector<4x4xf32>
    %78 = vector.extract_strided_slice %61 {offsets = [0, 16], sizes = [4, 188], strides = [1, 1]} : vector<4x222xf32> to vector<4x188xf32>
    %cst_56 = arith.constant dense<0.000000e+00> : vector<4x188xf32>
    %79 = tpu.matmul %77, %78, %cst_56 {dimension_numbers = #tpu.dot_dimension_numbers<[1], [0], [0], [1], [0, 0, 1, 1], [], []>} : vector<4x4xf32>, vector<4x188xf32>, vector<4x188xf32> -> vector<4x188xf32>
    %80 = arith.addf %75, %79 : vector<4x188xf32>
    %c4_57 = arith.constant 4 : index
    %c0_58 = arith.constant 0 : index
    %c0_59 = arith.constant 0 : index
    %81 = vector.load %arg6[%c4_57, %c0_58, %c0_59] : memref<9x4x4xf32, #tpu.memory_space<vmem>>, vector<1x4x4xf32>
    %82 = vector.shape_cast %81 : vector<1x4x4xf32> to vector<4x4xf32>
    %83 = vector.extract_strided_slice %61 {offsets = [0, 17], sizes = [4, 188], strides = [1, 1]} : vector<4x222xf32> to vector<4x188xf32>
    %cst_60 = arith.constant dense<0.000000e+00> : vector<4x188xf32>
    %84 = tpu.matmul %82, %83, %cst_60 {dimension_numbers = #tpu.dot_dimension_numbers<[1], [0], [0], [1], [0, 0, 1, 1], [], []>} : vector<4x4xf32>, vector<4x188xf32>, vector<4x188xf32> -> vector<4x188xf32>
    %85 = arith.addf %80, %84 : vector<4x188xf32>
    %c5_61 = arith.constant 5 : index
    %c0_62 = arith.constant 0 : index
    %c0_63 = arith.constant 0 : index
    %86 = vector.load %arg6[%c5_61, %c0_62, %c0_63] : memref<9x4x4xf32, #tpu.memory_space<vmem>>, vector<1x4x4xf32>
    %87 = vector.shape_cast %86 : vector<1x4x4xf32> to vector<4x4xf32>
    %88 = vector.extract_strided_slice %61 {offsets = [0, 18], sizes = [4, 188], strides = [1, 1]} : vector<4x222xf32> to vector<4x188xf32>
    %cst_64 = arith.constant dense<0.000000e+00> : vector<4x188xf32>
    %89 = tpu.matmul %87, %88, %cst_64 {dimension_numbers = #tpu.dot_dimension_numbers<[1], [0], [0], [1], [0, 0, 1, 1], [], []>} : vector<4x4xf32>, vector<4x188xf32>, vector<4x188xf32> -> vector<4x188xf32>
    %90 = arith.addf %85, %89 : vector<4x188xf32>
    %c6_65 = arith.constant 6 : index
    %c0_66 = arith.constant 0 : index
    %c0_67 = arith.constant 0 : index
    %91 = vector.load %arg6[%c6_65, %c0_66, %c0_67] : memref<9x4x4xf32, #tpu.memory_space<vmem>>, vector<1x4x4xf32>
    %92 = vector.shape_cast %91 : vector<1x4x4xf32> to vector<4x4xf32>
    %93 = vector.extract_strided_slice %61 {offsets = [0, 32], sizes = [4, 188], strides = [1, 1]} : vector<4x222xf32> to vector<4x188xf32>
    %cst_68 = arith.constant dense<0.000000e+00> : vector<4x188xf32>
    %94 = tpu.matmul %92, %93, %cst_68 {dimension_numbers = #tpu.dot_dimension_numbers<[1], [0], [0], [1], [0, 0, 1, 1], [], []>} : vector<4x4xf32>, vector<4x188xf32>, vector<4x188xf32> -> vector<4x188xf32>
    %95 = arith.addf %90, %94 : vector<4x188xf32>
    %c7_69 = arith.constant 7 : index
    %c0_70 = arith.constant 0 : index
    %c0_71 = arith.constant 0 : index
    %96 = vector.load %arg6[%c7_69, %c0_70, %c0_71] : memref<9x4x4xf32, #tpu.memory_space<vmem>>, vector<1x4x4xf32>
    %97 = vector.shape_cast %96 : vector<1x4x4xf32> to vector<4x4xf32>
    %98 = vector.extract_strided_slice %61 {offsets = [0, 33], sizes = [4, 188], strides = [1, 1]} : vector<4x222xf32> to vector<4x188xf32>
    %cst_72 = arith.constant dense<0.000000e+00> : vector<4x188xf32>
    %99 = tpu.matmul %97, %98, %cst_72 {dimension_numbers = #tpu.dot_dimension_numbers<[1], [0], [0], [1], [0, 0, 1, 1], [], []>} : vector<4x4xf32>, vector<4x188xf32>, vector<4x188xf32> -> vector<4x188xf32>
    %100 = arith.addf %95, %99 : vector<4x188xf32>
    %c8_73 = arith.constant 8 : index
    %c0_74 = arith.constant 0 : index
    %c0_75 = arith.constant 0 : index
    %101 = vector.load %arg6[%c8_73, %c0_74, %c0_75] : memref<9x4x4xf32, #tpu.memory_space<vmem>>, vector<1x4x4xf32>
    %102 = vector.shape_cast %101 : vector<1x4x4xf32> to vector<4x4xf32>
    %103 = vector.extract_strided_slice %61 {offsets = [0, 34], sizes = [4, 188], strides = [1, 1]} : vector<4x222xf32> to vector<4x188xf32>
    %cst_76 = arith.constant dense<0.000000e+00> : vector<4x188xf32>
    %104 = tpu.matmul %102, %103, %cst_76 {dimension_numbers = #tpu.dot_dimension_numbers<[1], [0], [0], [1], [0, 0, 1, 1], [], []>} : vector<4x4xf32>, vector<4x188xf32>, vector<4x188xf32> -> vector<4x188xf32>
    %105 = arith.addf %100, %104 : vector<4x188xf32>
    %c0_77 = arith.constant 0 : index
    %c0_78 = arith.constant 0 : index
    %106 = vector.load %arg7[%c0_77, %c0_78] : memref<4x1xf32, #tpu.memory_space<vmem>>, vector<4x1xf32>
    %107 = vector.broadcast %106 : vector<4x1xf32> to vector<4x188xf32>
    %108 = arith.addf %105, %107 : vector<4x188xf32>
    %cst_79 = arith.constant 0.000000e+00 : f32
    %109 = vector.broadcast %cst_79 : f32 to vector<4x188xf32>
    %110 = arith.cmpf oge, %108, %109 : vector<4x188xf32>
    %cst_80 = arith.constant 1.000000e-01 : f32
    %111 = vector.broadcast %cst_80 : f32 to vector<4x188xf32>
    %112 = arith.mulf %111, %108 : vector<4x188xf32>
    %113 = arith.select %110, %108, %112 : vector<4x188xi1>, vector<4x188xf32>
    %c0_81 = arith.constant 0 : index
    %c0_82 = arith.constant 0 : index
    %c0_83 = arith.constant 0 : index
    %114 = vector.load %arg8[%c0_81, %c0_82, %c0_83] : memref<9x4x4xf32, #tpu.memory_space<vmem>>, vector<1x4x4xf32>
    %115 = vector.shape_cast %114 : vector<1x4x4xf32> to vector<4x4xf32>
    %116 = vector.extract_strided_slice %113 {offsets = [0, 0], sizes = [4, 154], strides = [1, 1]} : vector<4x188xf32> to vector<4x154xf32>
    %cst_84 = arith.constant dense<0.000000e+00> : vector<4x154xf32>
    %117 = tpu.matmul %115, %116, %cst_84 {dimension_numbers = #tpu.dot_dimension_numbers<[1], [0], [0], [1], [0, 0, 1, 1], [], []>} : vector<4x4xf32>, vector<4x154xf32>, vector<4x154xf32> -> vector<4x154xf32>
    %c1_85 = arith.constant 1 : index
    %c0_86 = arith.constant 0 : index
    %c0_87 = arith.constant 0 : index
    %118 = vector.load %arg8[%c1_85, %c0_86, %c0_87] : memref<9x4x4xf32, #tpu.memory_space<vmem>>, vector<1x4x4xf32>
    %119 = vector.shape_cast %118 : vector<1x4x4xf32> to vector<4x4xf32>
    %120 = vector.extract_strided_slice %113 {offsets = [0, 1], sizes = [4, 154], strides = [1, 1]} : vector<4x188xf32> to vector<4x154xf32>
    %cst_88 = arith.constant dense<0.000000e+00> : vector<4x154xf32>
    %121 = tpu.matmul %119, %120, %cst_88 {dimension_numbers = #tpu.dot_dimension_numbers<[1], [0], [0], [1], [0, 0, 1, 1], [], []>} : vector<4x4xf32>, vector<4x154xf32>, vector<4x154xf32> -> vector<4x154xf32>
    %122 = arith.addf %117, %121 : vector<4x154xf32>
    %c2_89 = arith.constant 2 : index
    %c0_90 = arith.constant 0 : index
    %c0_91 = arith.constant 0 : index
    %123 = vector.load %arg8[%c2_89, %c0_90, %c0_91] : memref<9x4x4xf32, #tpu.memory_space<vmem>>, vector<1x4x4xf32>
    %124 = vector.shape_cast %123 : vector<1x4x4xf32> to vector<4x4xf32>
    %125 = vector.extract_strided_slice %113 {offsets = [0, 2], sizes = [4, 154], strides = [1, 1]} : vector<4x188xf32> to vector<4x154xf32>
    %cst_92 = arith.constant dense<0.000000e+00> : vector<4x154xf32>
    %126 = tpu.matmul %124, %125, %cst_92 {dimension_numbers = #tpu.dot_dimension_numbers<[1], [0], [0], [1], [0, 0, 1, 1], [], []>} : vector<4x4xf32>, vector<4x154xf32>, vector<4x154xf32> -> vector<4x154xf32>
    %127 = arith.addf %122, %126 : vector<4x154xf32>
    %c3_93 = arith.constant 3 : index
    %c0_94 = arith.constant 0 : index
    %c0_95 = arith.constant 0 : index
    %128 = vector.load %arg8[%c3_93, %c0_94, %c0_95] : memref<9x4x4xf32, #tpu.memory_space<vmem>>, vector<1x4x4xf32>
    %129 = vector.shape_cast %128 : vector<1x4x4xf32> to vector<4x4xf32>
    %130 = vector.extract_strided_slice %113 {offsets = [0, 16], sizes = [4, 154], strides = [1, 1]} : vector<4x188xf32> to vector<4x154xf32>
    %cst_96 = arith.constant dense<0.000000e+00> : vector<4x154xf32>
    %131 = tpu.matmul %129, %130, %cst_96 {dimension_numbers = #tpu.dot_dimension_numbers<[1], [0], [0], [1], [0, 0, 1, 1], [], []>} : vector<4x4xf32>, vector<4x154xf32>, vector<4x154xf32> -> vector<4x154xf32>
    %132 = arith.addf %127, %131 : vector<4x154xf32>
    %c4_97 = arith.constant 4 : index
    %c0_98 = arith.constant 0 : index
    %c0_99 = arith.constant 0 : index
    %133 = vector.load %arg8[%c4_97, %c0_98, %c0_99] : memref<9x4x4xf32, #tpu.memory_space<vmem>>, vector<1x4x4xf32>
    %134 = vector.shape_cast %133 : vector<1x4x4xf32> to vector<4x4xf32>
    %135 = vector.extract_strided_slice %113 {offsets = [0, 17], sizes = [4, 154], strides = [1, 1]} : vector<4x188xf32> to vector<4x154xf32>
    %cst_100 = arith.constant dense<0.000000e+00> : vector<4x154xf32>
    %136 = tpu.matmul %134, %135, %cst_100 {dimension_numbers = #tpu.dot_dimension_numbers<[1], [0], [0], [1], [0, 0, 1, 1], [], []>} : vector<4x4xf32>, vector<4x154xf32>, vector<4x154xf32> -> vector<4x154xf32>
    %137 = arith.addf %132, %136 : vector<4x154xf32>
    %c5_101 = arith.constant 5 : index
    %c0_102 = arith.constant 0 : index
    %c0_103 = arith.constant 0 : index
    %138 = vector.load %arg8[%c5_101, %c0_102, %c0_103] : memref<9x4x4xf32, #tpu.memory_space<vmem>>, vector<1x4x4xf32>
    %139 = vector.shape_cast %138 : vector<1x4x4xf32> to vector<4x4xf32>
    %140 = vector.extract_strided_slice %113 {offsets = [0, 18], sizes = [4, 154], strides = [1, 1]} : vector<4x188xf32> to vector<4x154xf32>
    %cst_104 = arith.constant dense<0.000000e+00> : vector<4x154xf32>
    %141 = tpu.matmul %139, %140, %cst_104 {dimension_numbers = #tpu.dot_dimension_numbers<[1], [0], [0], [1], [0, 0, 1, 1], [], []>} : vector<4x4xf32>, vector<4x154xf32>, vector<4x154xf32> -> vector<4x154xf32>
    %142 = arith.addf %137, %141 : vector<4x154xf32>
    %c6_105 = arith.constant 6 : index
    %c0_106 = arith.constant 0 : index
    %c0_107 = arith.constant 0 : index
    %143 = vector.load %arg8[%c6_105, %c0_106, %c0_107] : memref<9x4x4xf32, #tpu.memory_space<vmem>>, vector<1x4x4xf32>
    %144 = vector.shape_cast %143 : vector<1x4x4xf32> to vector<4x4xf32>
    %145 = vector.extract_strided_slice %113 {offsets = [0, 32], sizes = [4, 154], strides = [1, 1]} : vector<4x188xf32> to vector<4x154xf32>
    %cst_108 = arith.constant dense<0.000000e+00> : vector<4x154xf32>
    %146 = tpu.matmul %144, %145, %cst_108 {dimension_numbers = #tpu.dot_dimension_numbers<[1], [0], [0], [1], [0, 0, 1, 1], [], []>} : vector<4x4xf32>, vector<4x154xf32>, vector<4x154xf32> -> vector<4x154xf32>
    %147 = arith.addf %142, %146 : vector<4x154xf32>
    %c7_109 = arith.constant 7 : index
    %c0_110 = arith.constant 0 : index
    %c0_111 = arith.constant 0 : index
    %148 = vector.load %arg8[%c7_109, %c0_110, %c0_111] : memref<9x4x4xf32, #tpu.memory_space<vmem>>, vector<1x4x4xf32>
    %149 = vector.shape_cast %148 : vector<1x4x4xf32> to vector<4x4xf32>
    %150 = vector.extract_strided_slice %113 {offsets = [0, 33], sizes = [4, 154], strides = [1, 1]} : vector<4x188xf32> to vector<4x154xf32>
    %cst_112 = arith.constant dense<0.000000e+00> : vector<4x154xf32>
    %151 = tpu.matmul %149, %150, %cst_112 {dimension_numbers = #tpu.dot_dimension_numbers<[1], [0], [0], [1], [0, 0, 1, 1], [], []>} : vector<4x4xf32>, vector<4x154xf32>, vector<4x154xf32> -> vector<4x154xf32>
    %152 = arith.addf %147, %151 : vector<4x154xf32>
    %c8_113 = arith.constant 8 : index
    %c0_114 = arith.constant 0 : index
    %c0_115 = arith.constant 0 : index
    %153 = vector.load %arg8[%c8_113, %c0_114, %c0_115] : memref<9x4x4xf32, #tpu.memory_space<vmem>>, vector<1x4x4xf32>
    %154 = vector.shape_cast %153 : vector<1x4x4xf32> to vector<4x4xf32>
    %155 = vector.extract_strided_slice %113 {offsets = [0, 34], sizes = [4, 154], strides = [1, 1]} : vector<4x188xf32> to vector<4x154xf32>
    %cst_116 = arith.constant dense<0.000000e+00> : vector<4x154xf32>
    %156 = tpu.matmul %154, %155, %cst_116 {dimension_numbers = #tpu.dot_dimension_numbers<[1], [0], [0], [1], [0, 0, 1, 1], [], []>} : vector<4x4xf32>, vector<4x154xf32>, vector<4x154xf32> -> vector<4x154xf32>
    %157 = arith.addf %152, %156 : vector<4x154xf32>
    %c0_117 = arith.constant 0 : index
    %c0_118 = arith.constant 0 : index
    %158 = vector.load %arg9[%c0_117, %c0_118] : memref<4x1xf32, #tpu.memory_space<vmem>>, vector<4x1xf32>
    %159 = vector.broadcast %158 : vector<4x1xf32> to vector<4x154xf32>
    %160 = arith.addf %157, %159 : vector<4x154xf32>
    %c0_119 = arith.constant 0 : index
    %c0_120 = arith.constant 0 : index
    %161 = vector.load %arg12[%c0_119, %c0_120] : memref<154x9xf32, #tpu.memory_space<vmem>>, vector<154x9xf32>
    %cst_121 = arith.constant dense<0.000000e+00> : vector<4x9xf32>
    %162 = tpu.matmul %160, %161, %cst_121 {dimension_numbers = #tpu.dot_dimension_numbers<[1], [0], [0], [1], [0, 0, 1, 1], [], []>} : vector<4x154xf32>, vector<154x9xf32>, vector<4x9xf32> -> vector<4x9xf32>
    %c0_122 = arith.constant 0 : index
    %c0_123 = arith.constant 0 : index
    %163 = vector.load %arg10[%c0_122, %c0_123] : memref<4x4xf32, #tpu.memory_space<vmem>>, vector<4x4xf32>
    %cst_124 = arith.constant dense<0.000000e+00> : vector<4x9xf32>
    %164 = tpu.matmul %163, %162, %cst_124 {dimension_numbers = #tpu.dot_dimension_numbers<[1], [0], [0], [1], [0, 0, 1, 1], [], []>} : vector<4x4xf32>, vector<4x9xf32>, vector<4x9xf32> -> vector<4x9xf32>
    %c0_125 = arith.constant 0 : index
    %c0_126 = arith.constant 0 : index
    %165 = vector.load %arg11[%c0_125, %c0_126] : memref<4x1xf32, #tpu.memory_space<vmem>>, vector<4x1xf32>
    %166 = vector.broadcast %165 : vector<4x1xf32> to vector<4x9xf32>
    %167 = arith.addf %164, %166 : vector<4x9xf32>
    %168 = math.exp %167 : vector<4x9xf32>
    %cst_127 = arith.constant dense<0.000000e+00> : vector<4xf32>
    %169 = vector.multi_reduction <add>, %168, %cst_127 [1] : vector<4x9xf32> to vector<4xf32>
    %170 = vector.shape_cast %169 : vector<4xf32> to vector<4x1xf32>
    %cst_128 = arith.constant 9.000000e+00 : f32
    %171 = vector.broadcast %cst_128 : f32 to vector<4x1xf32>
    %172 = arith.divf %170, %171 : vector<4x1xf32>
    %173 = vector.broadcast %172 : vector<4x1xf32> to vector<4x9xf32>
    %174 = arith.subf %168, %173 : vector<4x9xf32>
    %c0_129 = arith.constant 0 : index
    %c0_130 = arith.constant 0 : index
    %c0_131 = arith.constant 0 : index
    %175 = vector.load %arg14[%c0_129, %c0_130, %c0_131] : memref<1x4x9xf32, #tpu.memory_space<vmem>>, vector<1x4x9xf32>
    %176 = vector.shape_cast %175 : vector<1x4x9xf32> to vector<4x9xf32>
    %177 = vector.shape_cast %174 : vector<4x9xf32> to vector<1x4x9xf32>
    tpu.vector_store %arg14[%c0_129, %c0_130, %c0_131], %177 {strides = array<i32>} : memref<1x4x9xf32, #tpu.memory_space<vmem>>, vector<1x4x9xf32>,
    return
  }
  func.func @transform_0(%arg0: i32) -> (i32, i32, i32) {
    %c0_i32 = arith.constant 0 : i32
    %c0_i32_0 = arith.constant 0 : i32
    %c0_i32_1 = arith.constant 0 : i32
    return %arg0, %c0_i32, %c0_i32_0 : i32, i32, i32
  }
  func.func @transform_1(%arg0: i32) -> (i32, i32) {
    %c0_i32 = arith.constant 0 : i32
    %c0_i32_0 = arith.constant 0 : i32
    %c0_i32_1 = arith.constant 0 : i32
    return %c0_i32, %c0_i32_0 : i32, i32
  }
  func.func @transform_2(%arg0: i32) -> (i32, i32) {
    %c0_i32 = arith.constant 0 : i32
    %c0_i32_0 = arith.constant 0 : i32
    %c0_i32_1 = arith.constant 0 : i32
    return %c0_i32, %c0_i32_0 : i32, i32
  }
  func.func @transform_3(%arg0: i32) -> (i32, i32, i32) {
    %c0_i32 = arith.constant 0 : i32
    %c0_i32_0 = arith.constant 0 : i32
    %c0_i32_1 = arith.constant 0 : i32
    %c0_i32_2 = arith.constant 0 : i32
    return %c0_i32, %c0_i32_0, %c0_i32_1 : i32, i32, i32
  }
  func.func @transform_4(%arg0: i32) -> (i32, i32) {
    %c0_i32 = arith.constant 0 : i32
    %c0_i32_0 = arith.constant 0 : i32
    %c0_i32_1 = arith.constant 0 : i32
    return %c0_i32, %c0_i32_0 : i32, i32
  }
  func.func @transform_5(%arg0: i32) -> (i32, i32, i32) {
    %c0_i32 = arith.constant 0 : i32
    %c0_i32_0 = arith.constant 0 : i32
    %c0_i32_1 = arith.constant 0 : i32
    %c0_i32_2 = arith.constant 0 : i32
    return %c0_i32, %c0_i32_0, %c0_i32_1 : i32, i32, i32
  }
  func.func @transform_6(%arg0: i32) -> (i32, i32) {
    %c0_i32 = arith.constant 0 : i32
    %c0_i32_0 = arith.constant 0 : i32
    %c0_i32_1 = arith.constant 0 : i32
    return %c0_i32, %c0_i32_0 : i32, i32
  }
  func.func @transform_7(%arg0: i32) -> (i32, i32, i32) {
    %c0_i32 = arith.constant 0 : i32
    %c0_i32_0 = arith.constant 0 : i32
    %c0_i32_1 = arith.constant 0 : i32
    %c0_i32_2 = arith.constant 0 : i32
    return %c0_i32, %c0_i32_0, %c0_i32_1 : i32, i32, i32
  }
  func.func @transform_8(%arg0: i32) -> (i32, i32) {
    %c0_i32 = arith.constant 0 : i32
    %c0_i32_0 = arith.constant 0 : i32
    %c0_i32_1 = arith.constant 0 : i32
    return %c0_i32, %c0_i32_0 : i32, i32
  }
  func.func @transform_9(%arg0: i32) -> (i32, i32) {
    %c0_i32 = arith.constant 0 : i32
    %c0_i32_0 = arith.constant 0 : i32
    %c0_i32_1 = arith.constant 0 : i32
    return %c0_i32, %c0_i32_0 : i32, i32
  }
  func.func @transform_10(%arg0: i32) -> (i32, i32) {
    %c0_i32 = arith.constant 0 : i32
    %c0_i32_0 = arith.constant 0 : i32
    %c0_i32_1 = arith.constant 0 : i32
    return %c0_i32, %c0_i32_0 : i32, i32
  }
  func.func @transform_11(%arg0: i32) -> (i32, i32) {
    %c0_i32 = arith.constant 0 : i32
    %c0_i32_0 = arith.constant 0 : i32
    %c0_i32_1 = arith.constant 0 : i32
    return %c0_i32, %c0_i32_0 : i32, i32
  }
  func.func @transform_12(%arg0: i32) -> (i32, i32, i32) {
    %c0_i32 = arith.constant 0 : i32
    %c0_i32_0 = arith.constant 0 : i32
    %c0_i32_1 = arith.constant 0 : i32
    return %arg0, %c0_i32, %c0_i32_0 : i32, i32, i32
  }
  func.func @transform_13(%arg0: i32) -> (i32, i32, i32) {
    %c0_i32 = arith.constant 0 : i32
    %c0_i32_0 = arith.constant 0 : i32
    %c0_i32_1 = arith.constant 0 : i32
    return %arg0, %c0_i32, %c0_i32_0 : i32, i32, i32
  }
}

module attributes {stable_mosaic.version = 11 : i64} {
  func.func @_wiener_kernel(%arg0: i32, %arg1: i32, %arg2: memref<1x1x256xf32, #tpu.memory_space<vmem>>, %arg3: memref<1x1x256xf32, #tpu.memory_space<vmem>>, %arg4: memref<1x4x256xf32, #tpu.memory_space<vmem>>, %arg5: memref<1x4x256xf32, #tpu.memory_space<vmem>>, %arg6: memref<1x4x256xf32, #tpu.memory_space<vmem>>, %arg7: memref<1x4x256xf32, #tpu.memory_space<vmem>>, %arg8: memref<1x4x256xf32, #tpu.memory_space<vmem>>, %arg9: memref<1x4x256xf32, #tpu.memory_space<vmem>>) attributes {dimension_semantics = [#tpu.dimension_semantics<parallel>, #tpu.dimension_semantics<parallel>], iteration_bounds = array<i64: 2, 3>, scalar_prefetch = 0 : i64, scratch_operands = 0 : i64, tpu.core_type = #tpu.core_type<tc>, window_params = [{transform_indices = @transform_0, window_bounds = array<i64: 1, 1, 256>}, {transform_indices = @transform_1, window_bounds = array<i64: 1, 1, 256>}, {transform_indices = @transform_2, window_bounds = array<i64: 1, 4, 256>}, {transform_indices = @transform_3, window_bounds = array<i64: 1, 4, 256>}, {transform_indices = @transform_4, window_bounds = array<i64: 1, 4, 256>}, {transform_indices = @transform_5, window_bounds = array<i64: 1, 4, 256>}, {transform_indices = @transform_6, window_bounds = array<i64: 1, 4, 256>}, {transform_indices = @transform_7, window_bounds = array<i64: 1, 4, 256>}]} {
    %c0 = arith.constant 0 : index
    %c0_0 = arith.constant 0 : index
    %c0_1 = arith.constant 0 : index
    %0 = vector.load %arg2[%c0, %c0_0, %c0_1] : memref<1x1x256xf32, #tpu.memory_space<vmem>>, vector<1x1x256xf32>
    %1 = vector.shape_cast %0 : vector<1x1x256xf32> to vector<1x256xf32>
    %c0_2 = arith.constant 0 : index
    %c0_3 = arith.constant 0 : index
    %c0_4 = arith.constant 0 : index
    %2 = vector.load %arg3[%c0_2, %c0_3, %c0_4] : memref<1x1x256xf32, #tpu.memory_space<vmem>>, vector<1x1x256xf32>
    %3 = vector.shape_cast %2 : vector<1x1x256xf32> to vector<1x256xf32>
    %c0_5 = arith.constant 0 : index
    %c0_6 = arith.constant 0 : index
    %c0_7 = arith.constant 0 : index
    %4 = vector.load %arg4[%c0_5, %c0_6, %c0_7] : memref<1x4x256xf32, #tpu.memory_space<vmem>>, vector<1x4x256xf32>
    %5 = vector.shape_cast %4 : vector<1x4x256xf32> to vector<4x256xf32>
    %c0_8 = arith.constant 0 : index
    %c0_9 = arith.constant 0 : index
    %c0_10 = arith.constant 0 : index
    %6 = vector.load %arg5[%c0_8, %c0_9, %c0_10] : memref<1x4x256xf32, #tpu.memory_space<vmem>>, vector<1x4x256xf32>
    %7 = vector.shape_cast %6 : vector<1x4x256xf32> to vector<4x256xf32>
    %c0_11 = arith.constant 0 : index
    %c0_12 = arith.constant 0 : index
    %c0_13 = arith.constant 0 : index
    %8 = vector.load %arg6[%c0_11, %c0_12, %c0_13] : memref<1x4x256xf32, #tpu.memory_space<vmem>>, vector<1x4x256xf32>
    %9 = vector.shape_cast %8 : vector<1x4x256xf32> to vector<4x256xf32>
    %c0_14 = arith.constant 0 : index
    %c0_15 = arith.constant 0 : index
    %c0_16 = arith.constant 0 : index
    %10 = vector.load %arg7[%c0_14, %c0_15, %c0_16] : memref<1x4x256xf32, #tpu.memory_space<vmem>>, vector<1x4x256xf32>
    %11 = vector.shape_cast %10 : vector<1x4x256xf32> to vector<4x256xf32>
    %12 = arith.mulf %1, %1 : vector<1x256xf32>
    %13 = arith.mulf %3, %3 : vector<1x256xf32>
    %14 = arith.addf %12, %13 : vector<1x256xf32>
    %15 = arith.mulf %5, %5 : vector<4x256xf32>
    %16 = vector.broadcast %14 : vector<1x256xf32> to vector<4x256xf32>
    %17 = arith.addf %16, %15 : vector<4x256xf32>
    %18 = arith.mulf %7, %7 : vector<4x256xf32>
    %19 = arith.addf %17, %18 : vector<4x256xf32>
    %20 = tpu.reciprocal %19 : vector<4x256xf32> -> vector<4x256xf32>
    %21 = vector.broadcast %1 : vector<1x256xf32> to vector<4x256xf32>
    %22 = arith.mulf %21, %20 : vector<4x256xf32>
    %23 = vector.broadcast %3 : vector<1x256xf32> to vector<4x256xf32>
    %24 = arith.mulf %23, %20 : vector<4x256xf32>
    %cst = arith.constant 0.000000e+00 : f32
    %25 = vector.broadcast %cst : f32 to vector<4x256xf32>
    %26 = arith.subf %25, %24 : vector<4x256xf32>
    %27 = arith.mulf %22, %9 : vector<4x256xf32>
    %28 = arith.mulf %26, %11 : vector<4x256xf32>
    %29 = arith.subf %27, %28 : vector<4x256xf32>
    %c0_17 = arith.constant 0 : index
    %c0_18 = arith.constant 0 : index
    %c0_19 = arith.constant 0 : index
    %30 = vector.load %arg8[%c0_17, %c0_18, %c0_19] : memref<1x4x256xf32, #tpu.memory_space<vmem>>, vector<1x4x256xf32>
    %31 = vector.shape_cast %30 : vector<1x4x256xf32> to vector<4x256xf32>
    %32 = vector.shape_cast %29 : vector<4x256xf32> to vector<1x4x256xf32>
    tpu.vector_store %arg8[%c0_17, %c0_18, %c0_19], %32 {strides = array<i32>} : memref<1x4x256xf32, #tpu.memory_space<vmem>>, vector<1x4x256xf32>,
    %33 = arith.mulf %22, %11 : vector<4x256xf32>
    %34 = arith.mulf %26, %9 : vector<4x256xf32>
    %35 = arith.addf %33, %34 : vector<4x256xf32>
    %c0_20 = arith.constant 0 : index
    %c0_21 = arith.constant 0 : index
    %c0_22 = arith.constant 0 : index
    %36 = vector.load %arg9[%c0_20, %c0_21, %c0_22] : memref<1x4x256xf32, #tpu.memory_space<vmem>>, vector<1x4x256xf32>
    %37 = vector.shape_cast %36 : vector<1x4x256xf32> to vector<4x256xf32>
    %38 = vector.shape_cast %35 : vector<4x256xf32> to vector<1x4x256xf32>
    tpu.vector_store %arg9[%c0_20, %c0_21, %c0_22], %38 {strides = array<i32>} : memref<1x4x256xf32, #tpu.memory_space<vmem>>, vector<1x4x256xf32>,
    return
  }
  func.func @transform_0(%arg0: i32, %arg1: i32) -> (i32, i32, i32) {
    %c0_i32 = arith.constant 0 : i32
    %c0_i32_0 = arith.constant 0 : i32
    return %arg0, %c0_i32, %arg1 : i32, i32, i32
  }
  func.func @transform_1(%arg0: i32, %arg1: i32) -> (i32, i32, i32) {
    %c0_i32 = arith.constant 0 : i32
    %c0_i32_0 = arith.constant 0 : i32
    return %arg0, %c0_i32, %arg1 : i32, i32, i32
  }
  func.func @transform_2(%arg0: i32, %arg1: i32) -> (i32, i32, i32) {
    %c0_i32 = arith.constant 0 : i32
    %c0_i32_0 = arith.constant 0 : i32
    return %arg0, %c0_i32, %arg1 : i32, i32, i32
  }
  func.func @transform_3(%arg0: i32, %arg1: i32) -> (i32, i32, i32) {
    %c0_i32 = arith.constant 0 : i32
    %c0_i32_0 = arith.constant 0 : i32
    return %arg0, %c0_i32, %arg1 : i32, i32, i32
  }
  func.func @transform_4(%arg0: i32, %arg1: i32) -> (i32, i32, i32) {
    %c0_i32 = arith.constant 0 : i32
    %c0_i32_0 = arith.constant 0 : i32
    return %arg0, %c0_i32, %arg1 : i32, i32, i32
  }
  func.func @transform_5(%arg0: i32, %arg1: i32) -> (i32, i32, i32) {
    %c0_i32 = arith.constant 0 : i32
    %c0_i32_0 = arith.constant 0 : i32
    return %arg0, %c0_i32, %arg1 : i32, i32, i32
  }
  func.func @transform_6(%arg0: i32, %arg1: i32) -> (i32, i32, i32) {
    %c0_i32 = arith.constant 0 : i32
    %c0_i32_0 = arith.constant 0 : i32
    return %arg0, %c0_i32, %arg1 : i32, i32, i32
  }
  func.func @transform_7(%arg0: i32, %arg1: i32) -> (i32, i32, i32) {
    %c0_i32 = arith.constant 0 : i32
    %c0_i32_0 = arith.constant 0 : i32
    return %arg0, %c0_i32, %arg1 : i32, i32, i32
  }
}

module attributes {stable_mosaic.version = 11 : i64} {
  func.func @_conv1x1_kernel(%arg0: i32, %arg1: i32, %arg2: memref<1x4x256xbf16, #tpu.memory_space<vmem>>, %arg3: memref<16x4xbf16, #tpu.memory_space<vmem>>, %arg4: memref<16x1xf32, #tpu.memory_space<vmem>>, %arg5: memref<1x16x256xf32, #tpu.memory_space<vmem>>) attributes {dimension_semantics = [#tpu.dimension_semantics<parallel>, #tpu.dimension_semantics<parallel>], iteration_bounds = array<i64: 2, 1>, scalar_prefetch = 0 : i64, scratch_operands = 0 : i64, tpu.core_type = #tpu.core_type<tc>, window_params = [{transform_indices = @transform_0, window_bounds = array<i64: 1, 4, 256>}, {pipeline_mode = #tpu.pipeline_mode<synchronous>, transform_indices = @transform_1, window_bounds = array<i64: 16, 4>}, {pipeline_mode = #tpu.pipeline_mode<synchronous>, transform_indices = @transform_2, window_bounds = array<i64: 16, 1>}, {transform_indices = @transform_3, window_bounds = array<i64: 1, 16, 256>}]} {
    %c0 = arith.constant 0 : index
    %c0_0 = arith.constant 0 : index
    %0 = vector.load %arg3[%c0, %c0_0] : memref<16x4xbf16, #tpu.memory_space<vmem>>, vector<16x4xbf16>
    %c0_1 = arith.constant 0 : index
    %c0_2 = arith.constant 0 : index
    %c0_3 = arith.constant 0 : index
    %1 = vector.load %arg2[%c0_1, %c0_2, %c0_3] : memref<1x4x256xbf16, #tpu.memory_space<vmem>>, vector<1x4x256xbf16>
    %2 = vector.shape_cast %1 : vector<1x4x256xbf16> to vector<4x256xbf16>
    %cst = arith.constant dense<0.000000e+00> : vector<16x256xf32>
    %3 = tpu.matmul %0, %2, %cst {dimension_numbers = #tpu.dot_dimension_numbers<[1], [0], [0], [1], [0, 0, 1, 1], [], []>} : vector<16x4xbf16>, vector<4x256xbf16>, vector<16x256xf32> -> vector<16x256xf32>
    %c0_4 = arith.constant 0 : index
    %c0_5 = arith.constant 0 : index
    %4 = vector.load %arg4[%c0_4, %c0_5] : memref<16x1xf32, #tpu.memory_space<vmem>>, vector<16x1xf32>
    %5 = vector.broadcast %4 : vector<16x1xf32> to vector<16x256xf32>
    %6 = arith.addf %3, %5 : vector<16x256xf32>
    %c0_6 = arith.constant 0 : index
    %c0_7 = arith.constant 0 : index
    %c0_8 = arith.constant 0 : index
    %7 = vector.load %arg5[%c0_6, %c0_7, %c0_8] : memref<1x16x256xf32, #tpu.memory_space<vmem>>, vector<1x16x256xf32>
    %8 = vector.shape_cast %7 : vector<1x16x256xf32> to vector<16x256xf32>
    %9 = vector.shape_cast %6 : vector<16x256xf32> to vector<1x16x256xf32>
    tpu.vector_store %arg5[%c0_6, %c0_7, %c0_8], %9 {strides = array<i32>} : memref<1x16x256xf32, #tpu.memory_space<vmem>>, vector<1x16x256xf32>,
    return
  }
  func.func @transform_0(%arg0: i32, %arg1: i32) -> (i32, i32, i32) {
    %c0_i32 = arith.constant 0 : i32
    %c0_i32_0 = arith.constant 0 : i32
    return %arg0, %c0_i32, %arg1 : i32, i32, i32
  }
  func.func @transform_1(%arg0: i32, %arg1: i32) -> (i32, i32) {
    %c0_i32 = arith.constant 0 : i32
    %c0_i32_0 = arith.constant 0 : i32
    %c0_i32_1 = arith.constant 0 : i32
    return %c0_i32, %c0_i32_0 : i32, i32
  }
  func.func @transform_2(%arg0: i32, %arg1: i32) -> (i32, i32) {
    %c0_i32 = arith.constant 0 : i32
    %c0_i32_0 = arith.constant 0 : i32
    %c0_i32_1 = arith.constant 0 : i32
    return %c0_i32, %c0_i32_0 : i32, i32
  }
  func.func @transform_3(%arg0: i32, %arg1: i32) -> (i32, i32, i32) {
    %c0_i32 = arith.constant 0 : i32
    %c0_i32_0 = arith.constant 0 : i32
    return %arg0, %c0_i32, %arg1 : i32, i32, i32
  }
}

</mosaic_0001>

<bundles_post_ra>
// kernel: cls_forward.3
= control target key start
LH: loop header
LB: loop body
LE: loop exit
PB: predicated region body
PF: predicated region fallthrough
CT: control target
= control target key end

     0   :  { %s2518_s25 = smov 0   ;;  %s2890_s0 = inlined_call_operand.vmem [shape: bf16[2,16,256], index: 0, kind: input, shape index: {}]   ;;  %s2891_s1 = inlined_call_operand.vmem [shape: bf16[4,16], index: 1, kind: input, shape index: {}]   ;;  %s2892_s2 = inlined_call_operand.vmem [shape: f32[4,1], index: 2, kind: input, shape index: {}]   ;;  %s2893_s3 = inlined_call_operand.vmem [shape: f32[9,4,4], index: 3, kind: input, shape index: {}]   ;;  %s2894_s4 = inlined_call_operand.vmem [shape: f32[4,1], index: 4, kind: input, shape index: {}]   ;;  %s2895_s5 = inlined_call_operand.vmem [shape: f32[9,4,4], index: 5, kind: input, shape index: {}]   ;;  %s2896_s6 = inlined_call_operand.vmem [shape: f32[4,1], index: 6, kind: input, shape index: {}]   ;;  %s2897_s7 = inlined_call_operand.vmem [shape: f32[9,4,4], index: 7, kind: input, shape index: {}]   ;;  %s2898_s8 = inlined_call_operand.vmem [shape: f32[4,1], index: 8, kind: input, shape index: {}]   ;;  %s2899_s9 = inlined_call_operand.vmem [shape: f32[4,4], index: 9, kind: input, shape index: {}]   ;;  %s2900_s10 = inlined_call_operand.vmem [shape: f32[4,1], index: 10, kind: input, shape index: {}]   ;;  %s2901_s11 = inlined_call_operand.vmem [shape: f32[154,9], index: 11, kind: input, shape index: {}]   ;;  %s2902_s12 = inlined_call_operand.vmem [shape: f32[2,4,256], index: 12, kind: output, shape index: {0}]   ;;  %s2903_s13 = inlined_call_operand.vmem [shape: f32[2,4,9], index: 13, kind: output, shape index: {1}]  }
   0x1 LB: > { %s2243_s26 = sadd.s32 4294967295, %s2436_s25   ;;  %p2247_p0 = scmp.ge.s32.totalorder %s2436_s25, 1  ;;  %s2436_s25 = sphi %s2518_s25, %s24_s25  }
   0x2   : > { %p390_p1 = scmp.lt.s32.totalorder %s2436_s25, 3 }
   0x4   : > { %p391_p2 = pnand %p2247_p0, %p390_p1 }
   0x5   : > { %p438_p3 = scmp.lt.s32.totalorder (!%p391_p2), %s2243_s26, 1  ;;  %s2439_s19 = smov (!%p391_p2), 126  }
   0x6   : > { %394 = sbr.rel (%p391_p2) target bundleno = 1412 (0x584), region = 68  ;;  %s2440_s20 = smov (!%p391_p2), 127  }
   0x7   : > { %s2441_s24 = smov (!%p391_p2), 112   ;;  %s2442_s27 = smov (!%p391_p2), 111  }
   0x8   : > { %s2443_s28 = smov (!%p391_p2), 96   ;;  %s2445_s30 = smov (!%p391_p2), 94  }
   0x9   : > { %s2446_s14 = smov (!%p391_p2), 95  }
   0xb   : > { %v2438_v0 = vmov 0   ;;  %v456_v1 = vld [vmem:[%s2892_s2] sm:$0xf]  ;;  %s2905_s26 = smov (!%p438_p3, %s2243_s26), 1  ;;  %vm472_vm0 = vcmask 130048   ;;  %vm505_vm1 = vcmask 1043456  }
   0xc   : > { %2423 = vset.pattern.permute.xlu0 %v2438_v0  ;;  %2424 = vset.pattern.permute.xlu2 %v2438_v0  ;;  %s2401_s29 = sshll.u32 %s2905_s26, 4  ;;  %v453_v8 = vld [vmem:[%s2891_s1] sm:$0x3]  ;;  %s2402_s18 = sshll.u32 %s2905_s26, 3  ;;  %vm518_vm2 = vcmask 31744   ;;  %vm516_vm3 = vcmask 1039360  }
   0xd   : > { %459 = vperm.xlu0 %2423, %v456_v1   ;;  %2425 = vset.pattern.permute.xlu1 %v2438_v0  ;;  %s442_s15 = scalar_lea.vmem %s2890_s0, %s2401_s29  ;;  %s447_s23 = scalar_lea.vmem %s2902_s12, %s2402_s18  ;;  %v509_v18 = vld [vmem:[%s2893_s3] sm:$0xf]  ;;  %v2272_v19 = vld [vmem:[%s2893_s3 + $0x8] sm:$0xf]  ;;  %v2263_v24 = vld [vmem:[%s2893_s3 + $0x4] sm:$0xf] }
   0xe   : > { %v2255_v2 = vld [vmem:[%s442_s15] sm:$0xf]  ;;  %v2404_v3 = vld [vmem:[%s442_s15 + $0x4] sm:$0xf0]  ;;  %v2403_v4 = vld [vmem:[%s442_s15 + $0x4] sm:$0xf] }
   0xf   : > { %v2256_v5 = vor.u32 %v2404_v3, %v2255_v2  ;;  %v2257_v6 = vld [vmem:[%s442_s15 + $0x8] sm:$0xf0]  ;;  %s2444_s29 = smov 110   ;;  %vm619_vm4 = vcmask 1031168   ;;  %vm733_vm5 = vcmask 908288   ;;  %vm847_vm6 = vcmask 785408  }
  0x10   : > { %v2260_v7 = vor.u32 %v2403_v4, %v2257_v6  ;;  %v2277_v29 = vld [vmem:[%s2893_s3 + $0xc] sm:$0xf]  ;;  %v2282_v31 = vld [vmem:[%s2893_s3 + $0x10] sm:$0xf]  ;;  %v1012_v35 = vld [vmem:[%s2894_s4] sm:$0xf] }
  0x11   : > { %483 = vmatpush.bf16.msra.mxu3 %v2256_v5  ;;  %v2292_v37 = vld [vmem:[%s2893_s3 + $0x18] sm:$0xf]  ;;  %vm676_vm7 = vcmask 916480   ;;  %vm790_vm8 = vcmask 900096   ;;  %v2287_v42 = vld [vmem:[%s2893_s3 + $0x14] sm:$0xf] }
  0x12   : > { %496 = vmatpush.bf16.msra.mxu1 %v2260_v7  ;;  %v2302_v44 = vld [vmem:[%s2893_s3 + $0x20] sm:$0xf]  ;;  %vm961_vm9 = vcmask 769024   ;;  %vm904_vm10 = vcmask 777216   ;;  %v2297_v48 = vld [vmem:[%s2893_s3 + $0x1c] sm:$0xf] }
  0x13   : > { %vm2064_vm15 = vcmask 1041408  }
  0x14   : > { %2261 = vmatmul.msk.bf16.vlgmr.msra.gmra.mxu3 %vm472_vm0, %v453_v8 }
  0x15   : > { %2262 = vmatmul.msk.bf16.vlgmr.msra.gmra.mxu1 %vm472_vm0, %v453_v8  ;;  %vm2060_vm0 = vcmask 211968  }
  0x7f   : > { %v460_v9 = vpop.permute.xlu0 %459 }
  0x92   : > { %v498_v10 = vpop.f32.mrf.mxu1 }
  0x93   : > { %v499_v11 = vadd.f32 %v498_v10, %v460_v9 }
  0x95   : > { %617 = vrot.lane.b32.xlu2 %v499_v11, %s2439_s19  ;;  %514 = vrot.lane.b32.xlu1 %v499_v11, %s2440_s20  ;;  %v504_v12 = vrot.slane %v499_v11, 4 }
  0x96   : > { %2270 = vmatpush.msk.msrb.mxu3 %vm505_vm1, %v499_v11 }
  0x97   : > { %v485_v13 = vpop.f32.mrf.mxu3  ;;  %2271 = vmatmul.msk.f32.vlgmr.msrb.gmra.mxu3 %vm518_vm2, %v509_v18 }
  0x98   : > { %v486_v14 = vadd.f32 %v485_v13, %v460_v9 }
  0x9a   : > { %v506_v15 = vsel %vm505_vm1, %v486_v14, %v504_v12  ;;  %v500_v16 = vpop.f32.mrf.mxu1  ;;  %512 = vrot.lane.b32.xlu0 %v486_v14, %s2440_s20 }
  0x9b   : > { %508 = vst [vmem:[%s447_s23] sm:$0xff] %v506_v15 }
  0x9d   : > { %674 = vrot.lane.b32.xlu2 %v499_v11, %s2441_s24  ;;  %615 = vrot.lane.b32.xlu1 %v486_v14, %s2439_s19 }
  0x9f   : > { %v487_v17 = vpop.f32.mrf.mxu3 }
  0xa2   : > { %731 = vrot.lane.b32.xlu0 %v499_v11, %s2442_s27 }
  0xa5   : > { %729 = vrot.lane.b32.xlu2 %v486_v14, %s2442_s27  ;;  %845 = vrot.lane.b32.xlu1 %v499_v11, %s2443_s28 }
  0xaa   : > { %843 = vrot.lane.b32.xlu0 %v486_v14, %s2443_s28 }
  0xad   : > { %786 = vrot.lane.b32.xlu2 %v486_v14, %s2444_s29  ;;  %672 = vrot.lane.b32.xlu1 %v486_v14, %s2441_s24 }
  0xb2   : > { %788 = vrot.lane.b32.xlu0 %v499_v11, %s2444_s29 }
  0xb5   : > { %959 = vrot.lane.b32.xlu2 %v499_v11, %s2445_s30  ;;  %957 = vrot.lane.b32.xlu1 %v486_v14, %s2445_s30 }
  0xba   : > { %900 = vrot.lane.b32.xlu0 %v486_v14, %s2446_s14 }
  0xbd   : > { %902 = vrot.lane.b32.xlu1 %v499_v11, %s2446_s14  ;;  %1015 = vperm.xlu2 %2424, %v1012_v35  }
  0xef   : > { %v618_v20 = vpop.permute.xlu2 %617 }
  0xf0   : > { %2275 = vmatpush.msk.msra.mxu3 %vm505_vm1, %v618_v20 }
  0xf1   : > { %2276 = vmatmul.msk.f32.vlgmr.msra.gmra.mxu3 %vm518_vm2, %v2272_v19 }
  0xf7   : > { %v675_v21 = vpop.permute.xlu2 %674 }
  0xff   : > { %v730_v22 = vpop.permute.xlu2 %729 }
 0x107   : > { %v515_v23 = vpop.permute.xlu1 %514  ;;  %v787_v27 = vpop.permute.xlu2 %786 }
 0x108   : > { %2266 = vmatpush.msk.msrb.mxu1 %vm505_vm1, %v515_v23 }
 0x109   : > { %2267 = vmatmul.msk.f32.vlgmr.msrb.gmra.mxu1 %vm518_vm2, %v2263_v24 }
 0x10a   : > { %2280 = vmatpush.msk.msra.mxu1 %vm505_vm1, %v675_v21 }
 0x10c   : > { %v513_v25 = vpop.permute.xlu0 %512 }
 0x10d   : > { %v517_v26 = vsel %vm516_vm3, %v513_v25, %v515_v23 }
 0x10e   : > { %2264 = vmatpush.msk.msra.mxu2 %vm505_vm1, %v517_v26 }
 0x10f   : > { %v616_v28 = vpop.permute.xlu1 %615  ;;  %2265 = vmatmul.msk.f32.vlgmr.msra.gmra.mxu2 %vm518_vm2, %v2263_v24  ;;  %v960_v36 = vpop.permute.xlu2 %959 }
 0x110   : > { %v620_v30 = vsel %vm619_vm4, %v616_v28, %v618_v20  ;;  %2268 = vmatpush.msk.msrb.mxu2 %vm505_vm1, %v486_v14 }
 0x111   : > { %2281 = vmatmul.msk.f32.vlgmr.msra.gmra.mxu1 %vm518_vm2, %v2277_v29 }
 0x112   : > { %2273 = vmatpush.msk.msra.mxu2 %vm505_vm1, %v620_v30 }
 0x114   : > { %v732_v32 = vpop.permute.xlu0 %731 }
 0x115   : > { %v734_v33 = vsel %vm733_vm5, %v730_v22, %v732_v32  ;;  %2285 = vmatpush.msk.msrb.mxu3 %vm505_vm1, %v732_v32 }
 0x116   : > { %2286 = vmatmul.msk.f32.vlgmr.msrb.gmra.mxu3 %vm518_vm2, %v2282_v31 }
 0x117   : > { %v846_v34 = vpop.permute.xlu1 %845  ;;  %2269 = vmatmul.msk.f32.vlgmr.msrb.gmra.mxu2 %vm518_vm2, %v509_v18  ;;  %v1016_v14 = vpop.permute.xlu2 %1015 }
 0x118   : > { %2283 = vmatpush.msk.msrb.mxu2 %vm505_vm1, %v734_v33  ;;  %2295 = vmatpush.msk.msra.mxu3 %vm505_vm1, %v846_v34 }
 0x11a   : > { %2305 = vmatpush.msk.msrb.mxu3 %vm505_vm1, %v960_v36  ;;  %v610_v52 = vpop.f32.mrf.mxu3 }
 0x11c   : > { %v844_v38 = vpop.permute.xlu0 %843 }
 0x11d   : > { %v848_v39 = vsel %vm847_vm6, %v844_v38, %v846_v34  ;;  %v2307_v34 = vld [vmem:[%s2895_s5 + $0x4] sm:$0xf] }
 0x11e   : > { %2296 = vmatmul.msk.f32.vlgmr.msra.gmra.mxu3 %vm518_vm2, %v2292_v37 }
 0x11f   : > { %v673_v40 = vpop.permute.xlu1 %672  ;;  %2274 = vmatmul.msk.f32.vlgmr.msra.gmra.mxu2 %vm518_vm2, %v2272_v19 }
 0x120   : > { %2293 = vmatpush.msk.msra.mxu2 %vm505_vm1, %v848_v39  ;;  %v677_v41 = vsel %vm676_vm7, %v673_v40, %v675_v21 }
 0x121   : > { %2278 = vmatpush.msk.msra.mxu0 %vm505_vm1, %v677_v41 }
 0x122   : > { %2279 = vmatmul.msk.f32.vlgmr.msra.gmra.mxu0 %vm518_vm2, %v2277_v29  ;;  %v1026_v29 = vld [vmem:[%s2895_s5] sm:$0xf] }
 0x124   : > { %v789_v43 = vpop.permute.xlu0 %788 }
 0x125   : > { %2290 = vmatpush.msk.msrb.mxu1 %vm505_vm1, %v789_v43  ;;  %v791_v45 = vsel %vm790_vm8, %v787_v27, %v789_v43  ;;  %v1522_v43 = vld [vmem:[%s2896_s6] sm:$0xf] }
 0x126   : > { %2288 = vmatpush.msk.msrb.mxu0 %vm505_vm1, %v791_v45  ;;  %2291 = vmatmul.msk.f32.vlgmr.msrb.gmra.mxu1 %vm518_vm2, %v2287_v42 }
 0x127   : > { %v958_v46 = vpop.permute.xlu1 %957  ;;  %2284 = vmatmul.msk.f32.vlgmr.msrb.gmra.mxu2 %vm518_vm2, %v2282_v31  ;;  %2306 = vmatmul.msk.f32.vlgmr.msrb.gmra.mxu3 %vm518_vm2, %v2302_v44  ;;  %v2321_v31 = vld [vmem:[%s2895_s5 + $0xc] sm:$0xf] }
 0x128   : > { %v962_v47 = vsel %vm961_vm9, %v958_v46, %v960_v36 }
 0x129   : > { %2303 = vmatpush.msk.msrb.mxu2 %vm505_vm1, %v962_v47  ;;  %v2331_v47 = vld [vmem:[%s2895_s5 + $0x14] sm:$0xf] }
 0x12a   : > { %2289 = vmatmul.msk.f32.vlgmr.msrb.gmra.mxu0 %vm518_vm2, %v2287_v42 }
 0x12c   : > { %v901_v49 = vpop.permute.xlu0 %900 }
 0x12f   : > { %v903_v50 = vpop.permute.xlu1 %902  ;;  %2294 = vmatmul.msk.f32.vlgmr.msra.gmra.mxu2 %vm518_vm2, %v2292_v37  ;;  %v2316_v37 = vld [vmem:[%s2895_s5 + $0x8] sm:$0xf] }
 0x130   : > { %v905_v51 = vsel %vm904_vm10, %v901_v49, %v903_v50  ;;  %2300 = vmatpush.msk.msra.mxu1 %vm505_vm1, %v903_v50  ;;  %v2336_v50 = vld [vmem:[%s2895_s5 + $0x18] sm:$0xf] }
 0x131   : > { %2298 = vmatpush.msk.msra.mxu0 %vm505_vm1, %v905_v51  ;;  %2301 = vmatmul.msk.f32.vlgmr.msra.gmra.mxu1 %vm518_vm2, %v2297_v48 }
 0x132   : > { %2299 = vmatmul.msk.f32.vlgmr.msra.gmra.mxu0 %vm518_vm2, %v2297_v48 }
 0x137   : > { %2304 = vmatmul.msk.f32.vlgmr.msrb.gmra.mxu2 %vm518_vm2, %v2302_v44  ;;  %v2326_v44 = vld [vmem:[%s2895_s5 + $0x10] sm:$0xf] }
 0x174   : > { %v665_v55 = vpop.f32.mrf.mxu3 }
 0x186   : > { %v563_v54 = vpop.f32.mrf.mxu1 }
 0x187   : > { %v611_v57 = vadd.f32 %v610_v52, %v563_v54 }
 0x189   : > { %v669_v60 = vadd.f32 %v665_v55, %v611_v57  ;;  %v2341_v55 = vld [vmem:[%s2895_s5 + $0x1c] sm:$0xf] }
 0x18e   : > { %v722_v58 = vpop.f32.mrf.mxu1 }
 0x18f   : > { %v726_v63 = vadd.f32 %v722_v58, %v669_v60 }
 0x192   : > { %v543_v53 = vpop.f32.mrf.mxu2 }
 0x199   : > { %v779_v59 = vpop.f32.mrf.mxu3 }
 0x19a   : > { %v590_v56 = vpop.f32.mrf.mxu2  ;;  %v783_v2 = vadd.f32 %v779_v59, %v726_v63  ;;  %v2346_v59 = vld [vmem:[%s2895_s5 + $0x20] sm:$0xf] }
 0x19b   : > { %v591_v3 = vadd.f32 %v590_v56, %v543_v53 }
 0x19f   : > { %v702_v62 = vpop.f32.mrf.mxu0 }
 0x1a1   : > { %v893_v1 = vpop.f32.mrf.mxu3 }
 0x1a2   : > { %v645_v61 = vpop.f32.mrf.mxu2 }
 0x1a3   : > { %v836_v0 = vpop.f32.mrf.mxu1  ;;  %v668_v4 = vadd.f32 %v645_v61, %v591_v3 }
 0x1a4   : > { %v840_v5 = vadd.f32 %v836_v0, %v783_v2 }
 0x1a5   : > { %v725_v8 = vadd.f32 %v702_v62, %v668_v4 }
 0x1a6   : > { %v897_v9 = vadd.f32 %v893_v1, %v840_v5 }
 0x1a7   : > { %v816_v7 = vpop.f32.mrf.mxu0 }
 0x1aa   : > { %v759_v6 = vpop.f32.mrf.mxu2  ;;  %v1007_v11 = vpop.f32.mrf.mxu3 }
 0x1ab   : > { %v782_v12 = vadd.f32 %v759_v6, %v725_v8 }
 0x1ad   : > { %v839_v17 = vadd.f32 %v816_v7, %v782_v12 }
 0x1ae   : > { %v950_v10 = vpop.f32.mrf.mxu1 }
 0x1af   : > { %v954_v13 = vadd.f32 %v950_v10, %v897_v9  ;;  %v930_v21 = vpop.f32.mrf.mxu0 }
 0x1b1   : > { %v1011_v15 = vadd.f32 %v1007_v11, %v954_v13 }
 0x1b2   : > { %v873_v16 = vpop.f32.mrf.mxu2 }
 0x1b3   : > { %v1019_v18 = vadd.f32 %v1016_v14, %v1011_v15  ;;  %v896_v20 = vadd.f32 %v873_v16, %v839_v17 }
 0x1b5   : > { %vm1021_vm11 = vcmp.ge.f32.partialorder %v1019_v18, 0.0  ;;  %v1023_v19 = vmul.f32 0.1, %v1019_v18  ;;  %v953_v23 = vadd.f32 %v930_v21, %v896_v20 }
 0x1b7   : > { %v1025_v22 = vsel %vm1021_vm11, %v1019_v18, %v1023_v19 }
 0x1b8   : > { %1190 = vrot.lane.b32.xlu2 %v1025_v22, %s2441_s24  ;;  %1134 = vrot.lane.b32.xlu0 %v1025_v22, %s2439_s19 }
 0x1b9   : > { %1033 = vrot.lane.b32.xlu1 %v1025_v22, %s2440_s20  ;;  %2314 = vmatpush.msk.msra.mxu3 %vm505_vm1, %v1025_v22 }
 0x1ba   : > { %v987_v24 = vpop.f32.mrf.mxu2  ;;  %2315 = vmatmul.msk.f32.vlgmr.msra.gmra.mxu3 %vm518_vm2, %v1026_v29 }
 0x1bb   : > { %v1010_v25 = vadd.f32 %v987_v24, %v953_v23 }
 0x1bd   : > { %v1018_v26 = vadd.f32 %v1016_v14, %v1010_v25 }
 0x1bf   : > { %vm1020_vm12 = vcmp.ge.f32.partialorder %v1018_v26, 0.0  ;;  %v1022_v27 = vmul.f32 0.1, %v1018_v26 }
 0x1c1   : > { %v1024_v28 = vsel %vm1020_vm12, %v1018_v26, %v1022_v27  ;;  %1246 = vrot.lane.b32.xlu1 %v1025_v22, %s2442_s27 }
 0x1c2   : > { %2312 = vmatpush.msk.msra.mxu2 %vm505_vm1, %v1024_v28  ;;  %1132 = vrot.lane.b32.xlu2 %v1024_v28, %s2439_s19 }
 0x1c3   : > { %1031 = vrot.lane.b32.xlu0 %v1024_v28, %s2440_s20  ;;  %2313 = vmatmul.msk.f32.vlgmr.msra.gmra.mxu2 %vm518_vm2, %v1026_v29 }
 0x1c9   : > { %1188 = vrot.lane.b32.xlu1 %v1024_v28, %s2441_s24 }
 0x1ca   : > { %1300 = vrot.lane.b32.xlu2 %v1024_v28, %s2444_s29 }
 0x1cb   : > { %1302 = vrot.lane.b32.xlu0 %v1025_v22, %s2444_s29 }
 0x1d1   : > { %1356 = vrot.lane.b32.xlu1 %v1024_v28, %s2443_s28 }
 0x1d2   : > { %1358 = vrot.lane.b32.xlu2 %v1025_v22, %s2443_s28 }
 0x1d3   : > { %1244 = vrot.lane.b32.xlu0 %v1024_v28, %s2442_s27 }
 0x1d9   : > { %1414 = vrot.lane.b32.xlu1 %v1025_v22, %s2446_s14 }
 0x1da   : > { %1468 = vrot.lane.b32.xlu2 %v1024_v28, %s2445_s30 }
 0x1db   : > { %1412 = vrot.lane.b32.xlu0 %v1024_v28, %s2446_s14 }
 0x1e1   : > { %1525 = vperm.xlu1 %2425, %v1522_v43   ;;  %v1536_v43 = vld [vmem:[%s2897_s7] sm:$0xf] }
 0x1e3   : > { %1470 = vrot.lane.b32.xlu0 %v1025_v22, %s2445_s30 }
 0x212   : > { %v1191_v30 = vpop.permute.xlu2 %1190 }
 0x213   : > { %2324 = vmatpush.msk.msrb.mxu3 %vm505_vm1, %v1191_v30 }
 0x214   : > { %2325 = vmatmul.msk.f32.vlgmr.msrb.gmra.mxu3 %vm518_vm2, %v2321_v31 }
 0x21c   : > { %v1133_v32 = vpop.permute.xlu2 %1132 }
 0x224   : > { %v1301_v33 = vpop.permute.xlu2 %1300 }
 0x22a   : > { %v1135_v35 = vpop.permute.xlu0 %1134 }
 0x22b   : > { %v1034_v36 = vpop.permute.xlu1 %1033  ;;  %v1136_v42 = vsel %vm619_vm4, %v1133_v32, %v1135_v35 }
 0x22c   : > { %2310 = vmatpush.msk.msrb.mxu1 %vm505_vm1, %v1034_v36  ;;  %v1359_v39 = vpop.permute.xlu2 %1358 }
 0x22d   : > { %2311 = vmatmul.msk.f32.vlgmr.msrb.gmra.mxu1 %vm518_vm2, %v2307_v34 }
 0x22e   : > { %2319 = vmatpush.msk.msra.mxu1 %vm505_vm1, %v1135_v35 }
 0x233   : > { %v1247_v38 = vpop.permute.xlu1 %1246 }
 0x234   : > { %2329 = vmatpush.msk.msrb.mxu1 %vm505_vm1, %v1247_v38  ;;  %v1469_v60 = vpop.permute.xlu2 %1468 }
 0x235   : > { %2320 = vmatmul.msk.f32.vlgmr.msra.gmra.mxu1 %vm518_vm2, %v2316_v37  ;;  %v1032_v40 = vpop.permute.xlu0 %1031 }
 0x236   : > { %2339 = vmatpush.msk.msra.mxu1 %vm505_vm1, %v1359_v39  ;;  %v1035_v41 = vsel %vm516_vm3, %v1032_v40, %v1034_v36  ;;  %v2032_v40 = vld [vmem:[%s2898_s8] sm:$0xf] }
 0x237   : > { %2308 = vmatpush.msk.msrb.mxu0 %vm505_vm1, %v1035_v41  ;;  %v2109_v41 = vld [vmem:[%s2900_s10] sm:$0xf] }
 0x238   : > { %2309 = vmatmul.msk.f32.vlgmr.msrb.gmra.mxu0 %vm518_vm2, %v2307_v34 }
 0x239   : > { %2317 = vmatpush.msk.msra.mxu0 %vm505_vm1, %v1136_v42 }
 0x23b   : > { %v1189_v45 = vpop.permute.xlu1 %1188 }
 0x23c   : > { %v1192_v46 = vsel %vm676_vm7, %v1189_v45, %v1191_v30 }
 0x23d   : > { %2322 = vmatpush.msk.msrb.mxu2 %vm505_vm1, %v1192_v46  ;;  %v1303_v48 = vpop.permute.xlu0 %1302  ;;  %2330 = vmatmul.msk.f32.vlgmr.msrb.gmra.mxu1 %vm518_vm2, %v2326_v44  ;;  %v1127_v1 = vpop.f32.mrf.mxu3  ;;  %v2351_v46 = vld [vmem:[%s2897_s7 + $0x4] sm:$0xf] }
 0x23e   : > { %v1304_v49 = vsel %vm790_vm8, %v1301_v33, %v1303_v48  ;;  %2323 = vmatmul.msk.f32.vlgmr.msrb.gmra.mxu2 %vm518_vm2, %v2321_v31  ;;  %2334 = vmatpush.msk.msra.mxu3 %vm505_vm1, %v1303_v48 }
 0x23f   : > { %2332 = vmatpush.msk.msra.mxu2 %vm505_vm1, %v1304_v49  ;;  %2335 = vmatmul.msk.f32.vlgmr.msra.gmra.mxu3 %vm518_vm2, %v2331_v47 }
 0x240   : > { %2318 = vmatmul.msk.f32.vlgmr.msra.gmra.mxu0 %vm518_vm2, %v2316_v37 }
 0x243   : > { %v1357_v51 = vpop.permute.xlu1 %1356 }
 0x244   : > { %v1360_v54 = vsel %vm847_vm6, %v1357_v51, %v1359_v39 }
 0x245   : > { %v1245_v52 = vpop.permute.xlu0 %1244  ;;  %2340 = vmatmul.msk.f32.vlgmr.msra.gmra.mxu1 %vm518_vm2, %v2336_v50 }
 0x246   : > { %v1248_v53 = vsel %vm733_vm5, %v1245_v52, %v1247_v38  ;;  %2333 = vmatmul.msk.f32.vlgmr.msra.gmra.mxu2 %vm518_vm2, %v2331_v47  ;;  %v1107_v2 = vpop.f32.mrf.mxu2  ;;  %v2360_v52 = vld [vmem:[%s2897_s7 + $0x8] sm:$0xf] }
 0x247   : > { %2327 = vmatpush.msk.msrb.mxu0 %vm505_vm1, %v1248_v53 }
 0x248   : > { %2328 = vmatmul.msk.f32.vlgmr.msrb.gmra.mxu0 %vm518_vm2, %v2326_v44 }
 0x249   : > { %2337 = vmatpush.msk.msra.mxu0 %vm505_vm1, %v1360_v54 }
 0x24b   : > { %v1415_v56 = vpop.permute.xlu1 %1414 }
 0x24c   : > { %2344 = vmatpush.msk.msrb.mxu3 %vm505_vm1, %v1415_v56 }
 0x24d   : > { %2345 = vmatmul.msk.f32.vlgmr.msrb.gmra.mxu3 %vm518_vm2, %v2341_v55  ;;  %v1413_v57 = vpop.permute.xlu0 %1412 }
 0x24e   : > { %v1416_v58 = vsel %vm904_vm10, %v1413_v57, %v1415_v56  ;;  %v2365_v56 = vld [vmem:[%s2897_s7 + $0xc] sm:$0xf]  ;;  %v2370_v57 = vld [vmem:[%s2897_s7 + $0x10] sm:$0xf] }
 0x24f   : > { %2342 = vmatpush.msk.msrb.mxu2 %vm505_vm1, %v1416_v58 }
 0x250   : > { %2338 = vmatmul.msk.f32.vlgmr.msra.gmra.mxu0 %vm518_vm2, %v2336_v50  ;;  %2343 = vmatmul.msk.f32.vlgmr.msrb.gmra.mxu2 %vm518_vm2, %v2341_v55 }
 0x253   : > { %v1526_v30 = vpop.permute.xlu1 %1525 }
 0x255   : > { %v1471_v61 = vpop.permute.xlu0 %1470 }
 0x256   : > { %v1472_v62 = vsel %vm961_vm9, %v1469_v60, %v1471_v61  ;;  %2349 = vmatpush.msk.msrb.mxu1 %vm505_vm1, %v1471_v61 }
 0x257   : > { %2347 = vmatpush.msk.msrb.mxu0 %vm505_vm1, %v1472_v62  ;;  %2350 = vmatmul.msk.f32.vlgmr.msrb.gmra.mxu1 %vm518_vm2, %v2346_v59 }
 0x258   : > { %2348 = vmatmul.msk.f32.vlgmr.msrb.gmra.mxu0 %vm518_vm2, %v2346_v59 }
 0x297   : > { %v1237_v6 = vpop.f32.mrf.mxu3 }
 0x2aa   : > { %v1080_v63 = vpop.f32.mrf.mxu1 }
 0x2ab   : > { %v1128_v5 = vadd.f32 %v1127_v1, %v1080_v63  ;;  %v2380_v63 = vld [vmem:[%s2897_s7 + $0x18] sm:$0xf]  ;;  %v2375_v1 = vld [vmem:[%s2897_s7 + $0x14] sm:$0xf] }
 0x2b2   : > { %v1181_v3 = vpop.f32.mrf.mxu1 }
 0x2b3   : > { %v1185_v8 = vadd.f32 %v1181_v3, %v1128_v5  ;;  %v2390_v5 = vld [vmem:[%s2897_s7 + $0x20] sm:$0xf] }
 0x2b5   : > { %v1060_v0 = vpop.f32.mrf.mxu0  ;;  %v1241_v13 = vadd.f32 %v1237_v6, %v1185_v8 }
 0x2b6   : > { %v1108_v9 = vadd.f32 %v1107_v2, %v1060_v0 }
 0x2ba   : > { %v1293_v10 = vpop.f32.mrf.mxu1 }
 0x2bb   : > { %v1297_v16 = vadd.f32 %v1293_v10, %v1241_v13  ;;  %v2053_v13 = vld [vmem:[%s2901_s11 + $0x68] sm:$0xff] }
 0x2bd   : > { %v1161_v4 = vpop.f32.mrf.mxu0 }
 0x2be   : > { %v1184_v12 = vadd.f32 %v1161_v4, %v1108_v9 }
 0x2c1   : > { %v1217_v7 = vpop.f32.mrf.mxu2 }
 0x2c2   : > { %v1349_v14 = vpop.f32.mrf.mxu3  ;;  %v1240_v15 = vadd.f32 %v1217_v7, %v1184_v12  ;;  %v1405_v18 = vpop.f32.mrf.mxu1  ;;  %v2385_v7 = vld [vmem:[%s2897_s7 + $0x1c] sm:$0xf]  ;;  %v2054_v12 = vld [vmem:[%s2901_s11 + $0x70] sm:$0xff] }
 0x2c3   : > { %v1353_v20 = vadd.f32 %v1349_v14, %v1297_v16  ;;  %v2052_v14 = vld [vmem:[%s2901_s11 + $0x60] sm:$0xff]  ;;  %v2050_v16 = vld [vmem:[%s2901_s11 + $0x50] sm:$0xff] }
 0x2c5   : > { %v1273_v11 = vpop.f32.mrf.mxu0  ;;  %v1409_v24 = vadd.f32 %v1405_v18, %v1353_v20  ;;  %v2048_v18 = vld [vmem:[%s2901_s11 + $0x40] sm:$0xff]  ;;  %v2046_v20 = vld [vmem:[%s2901_s11 + $0x30] sm:$0xff] }
 0x2c6   : > { %v1296_v19 = vadd.f32 %v1273_v11, %v1240_v15  ;;  %v2055_v11 = vld [vmem:[%s2901_s11 + $0x78] sm:$0xff] }
 0x2c7   : > { %v2051_v15 = vld [vmem:[%s2901_s11 + $0x58] sm:$0xff] }
 0x2c9   : > { %v1329_v17 = vpop.f32.mrf.mxu2 }
 0x2ca   : > { %v1352_v22 = vadd.f32 %v1329_v17, %v1296_v19  ;;  %v2049_v17 = vld [vmem:[%s2901_s11 + $0x48] sm:$0xff]  ;;  %v2047_v19 = vld [vmem:[%s2901_s11 + $0x38] sm:$0xff] }
 0x2cd   : > { %v1385_v21 = vpop.f32.mrf.mxu0 }
 0x2ce   : > { %v1408_v25 = vadd.f32 %v1385_v21, %v1352_v22  ;;  %v2045_v21 = vld [vmem:[%s2901_s11 + $0x28] sm:$0xff]  ;;  %v2044_v22 = vld [vmem:[%s2901_s11 + $0x20] sm:$0xff] }
 0x2d0   : > { %v1461_v23 = vpop.f32.mrf.mxu3 }
 0x2d1   : > { %v1465_v26 = vadd.f32 %v1461_v23, %v1409_v24  ;;  %v2059_v23 = vld [vmem:[%s2901_s11 + $0x98] sm:$0x3] }
 0x2d2   : > { %v2043_v24 = vld [vmem:[%s2901_s11 + $0x18] sm:$0xff] }
 0x2d3   : > { %v1441_v27 = vpop.f32.mrf.mxu2 }
 0x2d4   : > { %v1464_v28 = vadd.f32 %v1441_v27, %v1408_v25  ;;  %v1517_v29 = vpop.f32.mrf.mxu1 }
 0x2d5   : > { %v1521_v31 = vadd.f32 %v1517_v29, %v1465_v26  ;;  %v1497_v32 = vpop.f32.mrf.mxu0  ;;  %v2042_v29 = vld [vmem:[%s2901_s11 + $0x10] sm:$0xff] }
 0x2d6   : > { %v1520_v33 = vadd.f32 %v1497_v32, %v1464_v28  ;;  %v2058_v28 = vld [vmem:[%s2901_s11 + $0x90] sm:$0xff]  ;;  %v2041_v32 = vld [vmem:[%s2901_s11 + $0x8] sm:$0xff] }
 0x2d7   : > { %v1529_v34 = vadd.f32 %v1526_v30, %v1521_v31  ;;  %v2057_v31 = vld [vmem:[%s2901_s11 + $0x88] sm:$0xff] }
 0x2d8   : > { %v1528_v35 = vadd.f32 %v1526_v30, %v1520_v33  ;;  %v2056_v33 = vld [vmem:[%s2901_s11 + $0x80] sm:$0xff] }
 0x2d9   : > { %vm1531_vm13 = vcmp.ge.f32.partialorder %v1529_v34, 0.0  ;;  %v1533_v36 = vmul.f32 0.1, %v1529_v34 }
 0x2da   : > { %vm1530_vm14 = vcmp.ge.f32.partialorder %v1528_v35, 0.0  ;;  %v1532_v37 = vmul.f32 0.1, %v1528_v35 }
 0x2db   : > { %v1535_v38 = vsel %vm1531_vm13, %v1529_v34, %v1533_v36  ;;  %v2040_v34 = vld [vmem:[%s2901_s11] sm:$0xff] }
 0x2dc   : > { %v1534_v39 = vsel %vm1530_vm14, %v1528_v35, %v1532_v37  ;;  %1543 = vrot.lane.b32.xlu0 %v1535_v38, %s2440_s20  ;;  %2358 = vmatpush.msk.msra.mxu1 %vm505_vm1, %v1535_v38 }
 0x2dd   : > { %1642 = vrot.lane.b32.xlu1 %v1534_v39, %s2439_s19  ;;  %1541 = vrot.lane.b32.xlu2 %v1534_v39, %s2440_s20 }
 0x2de   : > { %2356 = vmatpush.msk.msra.mxu0 %vm505_vm1, %v1534_v39  ;;  %2359 = vmatmul.msk.f32.vlgmr.msra.gmra.mxu1 %vm518_vm2, %v1536_v43 }
 0x2df   : > { %2357 = vmatmul.msk.f32.vlgmr.msra.gmra.mxu0 %vm518_vm2, %v1536_v43 }
 0x2e4   : > { %1700 = vrot.lane.b32.xlu0 %v1535_v38, %s2441_s24 }
 0x2e5   : > { %1756 = vrot.lane.b32.xlu1 %v1535_v38, %s2442_s27  ;;  %1644 = vrot.lane.b32.xlu2 %v1535_v38, %s2439_s19 }
 0x2ec   : > { %1754 = vrot.lane.b32.xlu0 %v1534_v39, %s2442_s27 }
 0x2ed   : > { %1866 = vrot.lane.b32.xlu1 %v1534_v39, %s2443_s28  ;;  %1868 = vrot.lane.b32.xlu2 %v1535_v38, %s2443_s28 }
 0x2f4   : > { %1810 = vrot.lane.b32.xlu0 %v1534_v39, %s2444_s29 }
 0x2f5   : > { %1812 = vrot.lane.b32.xlu1 %v1535_v38, %s2444_s29  ;;  %1698 = vrot.lane.b32.xlu2 %v1534_v39, %s2441_s24  ;;  %s2252_s24 = sshll.u32 %s2905_s26, 2 }
 0x2fc   : > { %1980 = vrot.lane.b32.xlu0 %v1535_v38, %s2445_s30 }
 0x2fd   : > { %1922 = vrot.lane.b32.xlu1 %v1534_v39, %s2446_s14  ;;  %1978 = vrot.lane.b32.xlu2 %v1534_v39, %s2445_s30  ;;  %s451_s30 = scalar_lea.vmem %s2903_s13, %s2252_s24 }
 0x304   : > { %2035 = vperm.xlu0 %2423, %v2032_v40  }
 0x305   : > { %2112 = vperm.xlu1 %2425, %v2109_v41   ;;  %1924 = vrot.lane.b32.xlu2 %v1535_v38, %s2446_s14 }
 0x337   : > { %v1542_v42 = vpop.permute.xlu2 %1541 }
 0x33f   : > { %v1645_v44 = vpop.permute.xlu2 %1644 }
 0x347   : > { %v1869_v45 = vpop.permute.xlu2 %1868 }
 0x34e   : > { %v1544_v47 = vpop.permute.xlu0 %1543 }
 0x34f   : > { %v1545_v48 = vsel %vm516_vm3, %v1542_v42, %v1544_v47  ;;  %v1643_v49 = vpop.permute.xlu1 %1642  ;;  %2354 = vmatpush.msk.msra.mxu3 %vm505_vm1, %v1544_v47  ;;  %v1699_v51 = vpop.permute.xlu2 %1698  ;;  %vm2143_vm3 = vcmask 68608  }
 0x350   : > { %v1646_v50 = vsel %vm619_vm4, %v1643_v49, %v1645_v44  ;;  %2352 = vmatpush.msk.msra.mxu2 %vm505_vm1, %v1545_v48  ;;  %2355 = vmatmul.msk.f32.vlgmr.msra.gmra.mxu3 %vm518_vm2, %v2351_v46 }
 0x351   : > { %2363 = vmatpush.msk.msrb.mxu3 %vm505_vm1, %v1645_v44  ;;  %2353 = vmatmul.msk.f32.vlgmr.msra.gmra.mxu2 %vm518_vm2, %v2351_v46 }
 0x352   : > { %2361 = vmatpush.msk.msrb.mxu2 %vm505_vm1, %v1646_v50 }
 0x356   : > { %v1701_v53 = vpop.permute.xlu0 %1700 }
 0x357   : > { %v1702_v54 = vsel %vm676_vm7, %v1699_v51, %v1701_v53  ;;  %v1757_v55 = vpop.permute.xlu1 %1756  ;;  %2368 = vmatpush.msk.msrb.mxu1 %vm505_vm1, %v1701_v53  ;;  %v1979_v59 = vpop.permute.xlu2 %1978 }
 0x358   : > { %2364 = vmatmul.msk.f32.vlgmr.msrb.gmra.mxu3 %vm518_vm2, %v2360_v52  ;;  %2366 = vmatpush.msk.msrb.mxu0 %vm505_vm1, %v1702_v54 }
 0x359   : > { %2373 = vmatpush.msk.msra.mxu3 %vm505_vm1, %v1757_v55  ;;  %2362 = vmatmul.msk.f32.vlgmr.msrb.gmra.mxu2 %vm518_vm2, %v2360_v52 }
 0x35a   : > { %2369 = vmatmul.msk.f32.vlgmr.msrb.gmra.mxu1 %vm518_vm2, %v2365_v56  ;;  %2367 = vmatmul.msk.f32.vlgmr.msrb.gmra.mxu0 %vm518_vm2, %v2365_v56 }
 0x35b   : > { %2383 = vmatpush.msk.msrb.mxu3 %vm505_vm1, %v1869_v45  ;;  %v1637_v25 = vpop.f32.mrf.mxu1 }
 0x35c   : > { %v1617_v30 = vpop.f32.mrf.mxu0 }
 0x35e   : > { %v1755_v58 = vpop.permute.xlu0 %1754 }
 0x35f   : > { %v1758_v60 = vsel %vm733_vm5, %v1755_v58, %v1757_v55  ;;  %v1867_v61 = vpop.permute.xlu1 %1866  ;;  %v1925_v4 = vpop.permute.xlu2 %1924 }
 0x360   : > { %v1870_v62 = vsel %vm847_vm6, %v1867_v61, %v1869_v45  ;;  %2371 = vmatpush.msk.msra.mxu2 %vm505_vm1, %v1758_v60  ;;  %2374 = vmatmul.msk.f32.vlgmr.msra.gmra.mxu3 %vm518_vm2, %v2370_v57 }
 0x361   : > { %2372 = vmatmul.msk.f32.vlgmr.msra.gmra.mxu2 %vm518_vm2, %v2370_v57 }
 0x362   : > { %2381 = vmatpush.msk.msrb.mxu2 %vm505_vm1, %v1870_v62 }
 0x366   : > { %v1811_v0 = vpop.permute.xlu0 %1810 }
 0x367   : > { %v1813_v2 = vpop.permute.xlu1 %1812 }
 0x368   : > { %v1814_v3 = vsel %vm790_vm8, %v1811_v0, %v1813_v2  ;;  %2378 = vmatpush.msk.msra.mxu1 %vm505_vm1, %v1813_v2  ;;  %2384 = vmatmul.msk.f32.vlgmr.msrb.gmra.mxu3 %vm518_vm2, %v2380_v63 }
 0x369   : > { %2376 = vmatpush.msk.msra.mxu0 %vm505_vm1, %v1814_v3  ;;  %2379 = vmatmul.msk.f32.vlgmr.msra.gmra.mxu1 %vm518_vm2, %v2375_v1 }
 0x36a   : > { %2382 = vmatmul.msk.f32.vlgmr.msrb.gmra.mxu2 %vm518_vm2, %v2380_v63  ;;  %2388 = vmatpush.msk.msrb.mxu1 %vm505_vm1, %v1925_v4 }
 0x36b   : > { %2377 = vmatmul.msk.f32.vlgmr.msra.gmra.mxu0 %vm518_vm2, %v2375_v1 }
 0x36c   : > { %2395 = vmatpush.msk.msra.mxu1 %vm2064_vm15, %v2059_v23 }
 0x36e   : > { %v1981_v6 = vpop.permute.xlu0 %1980  ;;  %2101 = vmatpush.msra.mxu1 %v2058_v28 }
 0x36f   : > { %v1982_v8 = vsel %vm961_vm9, %v1979_v59, %v1981_v6  ;;  %v1923_v9 = vpop.permute.xlu1 %1922  ;;  %2393 = vmatpush.msk.msra.mxu3 %vm505_vm1, %v1981_v6 }
 0x370   : > { %v1926_v10 = vsel %vm904_vm10, %v1923_v9, %v1925_v4  ;;  %2391 = vmatpush.msk.msra.mxu2 %vm505_vm1, %v1982_v8  ;;  %2394 = vmatmul.msk.f32.vlgmr.msra.gmra.mxu3 %vm518_vm2, %v2390_v5 }
 0x371   : > { %2386 = vmatpush.msk.msrb.mxu0 %vm505_vm1, %v1926_v10  ;;  %2389 = vmatmul.msk.f32.vlgmr.msrb.gmra.mxu1 %vm518_vm2, %v2385_v7 }
 0x372   : > { %2392 = vmatmul.msk.f32.vlgmr.msra.gmra.mxu2 %vm518_vm2, %v2390_v5  ;;  %2102 = vmatpush.msra.mxu1 %v2057_v31 }
 0x373   : > { %2387 = vmatmul.msk.f32.vlgmr.msrb.gmra.mxu0 %vm518_vm2, %v2385_v7  ;;  %v2108_v7 = vld [vmem:[%s2899_s9] sm:$0xf] }
 0x374   : > { %2068 = vmatpush.msra.mxu0 %v2055_v11  ;;  %2103 = vmatpush.msra.mxu1 %v2056_v33 }
 0x376   : > { %2069 = vmatpush.msra.mxu0 %v2054_v12  ;;  %v2036_v63 = vpop.permute.xlu0 %2035 }
 0x377   : > { %v2113_v8 = vpop.permute.xlu1 %2112 }
 0x378   : > { %2070 = vmatpush.msra.mxu0 %v2053_v13 }
 0x37a   : > { %2071 = vmatpush.msra.mxu0 %v2052_v14  ;;  %v2447_v14 = vmov 9.0  }
 0x37c   : > { %2072 = vmatpush.msra.mxu0 %v2051_v15 }
 0x37e   : > { %2073 = vmatpush.msra.mxu0 %v2050_v16 }
 0x380   : > { %2074 = vmatpush.msra.mxu0 %v2049_v17 }
 0x382   : > { %2075 = vmatpush.msra.mxu0 %v2048_v18 }
 0x384   : > { %2076 = vmatpush.msra.mxu0 %v2047_v19 }
 0x386   : > { %2077 = vmatpush.msra.mxu0 %v2046_v20 }
 0x388   : > { %2078 = vmatpush.msra.mxu0 %v2045_v21 }
 0x38a   : > { %2079 = vmatpush.msra.mxu0 %v2044_v22 }
 0x38c   : > { %2080 = vmatpush.msra.mxu0 %v2043_v24 }
 0x38e   : > { %2081 = vmatpush.msra.mxu0 %v2042_v29 }
 0x390   : > { %2082 = vmatpush.msra.mxu0 %v2041_v32 }
 0x392   : > { %2083 = vmatpush.msra.mxu0 %v2040_v34 }
 0x3d3   : > { %v1590_v26 = vpop.f32.mrf.mxu3 }
 0x3d4   : > { %v1570_v27 = vpop.f32.mrf.mxu2  ;;  %v1638_v39 = vadd.f32 %v1637_v25, %v1590_v26 }
 0x3d5   : > { %v1618_v40 = vadd.f32 %v1617_v30, %v1570_v27 }
 0x3d7   : > { %v1747_v37 = vpop.f32.mrf.mxu1  ;;  %v1727_v38 = vpop.f32.mrf.mxu0 }
 0x3db   : > { %v1691_v35 = vpop.f32.mrf.mxu3 }
 0x3dc   : > { %v1671_v36 = vpop.f32.mrf.mxu2  ;;  %v1695_v41 = vadd.f32 %v1691_v35, %v1638_v39 }
 0x3dd   : > { %v1694_v43 = vadd.f32 %v1671_v36, %v1618_v40 }
 0x3de   : > { %v1751_v45 = vadd.f32 %v1747_v37, %v1695_v41 }
 0x3df   : > { %v1750_v47 = vadd.f32 %v1727_v38, %v1694_v43 }
 0x3e3   : > { %v1803_v42 = vpop.f32.mrf.mxu3 }
 0x3e4   : > { %v1783_v44 = vpop.f32.mrf.mxu2  ;;  %v1807_v48 = vadd.f32 %v1803_v42, %v1751_v45 }
 0x3e5   : > { %v1806_v50 = vadd.f32 %v1783_v44, %v1750_v47 }
 0x3e6   : > { %v1859_v46 = vpop.f32.mrf.mxu1 }
 0x3e7   : > { %v1863_v52 = vadd.f32 %v1859_v46, %v1807_v48 }
 0x3e8   : > { %v1839_v49 = vpop.f32.mrf.mxu0 }
 0x3e9   : > { %v1862_v54 = vadd.f32 %v1839_v49, %v1806_v50 }
 0x3eb   : > { %v1915_v51 = vpop.f32.mrf.mxu3 }
 0x3ec   : > { %v1919_v55 = vadd.f32 %v1915_v51, %v1863_v52 }
 0x3ed   : > { %v1895_v53 = vpop.f32.mrf.mxu2 }
 0x3ee   : > { %v1971_v56 = vpop.f32.mrf.mxu1  ;;  %v1918_v57 = vadd.f32 %v1895_v53, %v1862_v54 }
 0x3ef   : > { %v1975_v59 = vadd.f32 %v1971_v56, %v1919_v55 }
 0x3f0   : > { %v1951_v58 = vpop.f32.mrf.mxu0 }
 0x3f1   : > { %v1974_v61 = vadd.f32 %v1951_v58, %v1918_v57 }
 0x3f3   : > { %v2027_v60 = vpop.f32.mrf.mxu3 }
 0x3f4   : > { %v2031_v62 = vadd.f32 %v2027_v60, %v1975_v59 }
 0x3f5   : > { %v2007_v0 = vpop.f32.mrf.mxu2 }
 0x3f6   : > { %v2039_v1 = vadd.f32 %v2036_v63, %v2031_v62  ;;  %v2030_v2 = vadd.f32 %v2007_v0, %v1974_v61 }
 0x3f8   : > { %v2038_v3 = vadd.f32 %v2036_v63, %v2030_v2  ;;  %2396 = vmatmul.msk.f32.vlgmr.msra.gmra.mxu1 %vm2060_vm0, %v2039_v1 }
 0x3fa   : > { %2084 = vmatmul.f32.vlgmr.msra.gmra.mxu0 %v2038_v3 }
 0x475   : > { %v2105_v4 = vpop.f32.mrf.mxu1 }
 0x477   : > { %v2085_v5 = vpop.f32.mrf.mxu0 }
 0x478   : > { %v2106_v6 = vadd.f32 %v2105_v4, %v2085_v5 }
 0x47a   : > { %2397 = vmatpush.msk.msrb.mxu2 %vm505_vm1, %v2106_v6 }
 0x47b   : > { %2398 = vmatmul.msk.f32.vlgmr.msrb.gmra.mxu2 %vm518_vm2, %v2108_v7 }
 0x4fe   : > { %v2138_v9 = vpop.f32.mrf.mxu2 }
 0x4ff   : > { %v2139_v10 = vadd.f32 %v2138_v9, %v2113_v8 }
 0x501   : > { %v2141_v11 = vmul.f32 1.442695, %v2139_v10 }
 0x503   : > { %2426 = vpow2.f32 %v2141_v11 }
 0x504   : > { %2428 = vrcp.f32 %v2447_v14 }
 0x509   : > { %v2427_v12 = vpop.eup %2426 }
 0x50a   : > { %v2144_v13 = vsel %vm2143_vm3, %v2427_v12, 0.0  ;;  %v2429_v15 = vpop.eup %2428 }
 0x50b   : > { %2145 = vadd.xlane.f32.xlu2 %v2144_v13  ;;  %v2148_v16 = vmul.f32 9.0, %v2429_v15  ;;  %vm2152_vm1 = vweird.f32 %v2429_v15 }
 0x50d   : > { %v2149_v17 = vsub.f32 1.0, %v2148_v16 }
 0x50f   : > { %v2150_v18 = vmul.f32 %v2429_v15, %v2149_v17 }
 0x511   : > { %v2151_v19 = vadd.f32 %v2429_v15, %v2150_v18 }
 0x513   : > { %v2153_v20 = vsel %vm2152_vm1, %v2429_v15, %v2151_v19 }
 0x57e   : > { %v2146_v21 = vpop.xlane.xlu2 %2145 }
 0x57f   : > { %v2154_v22 = vmul.f32 %v2153_v20, %v2146_v21 }
 0x581   : > { %v2155_v23 = vsub.f32 %v2427_v12, %v2154_v22 }
 0x583   : > { %2156 = vst.msk [vmem:[%s451_s30] sm:$0xf] %vm2143_vm3, %v2155_v23 }
 0x584 PF: > { %s24_s25 = sadd.s32 1, %s2436_s25  }
 0x585   : > { %p21_p4 = scmp.ge.s32.totalorder %s24_s25, 4  }
 0x587   :  { %23 = sbr.rel (!%p21_p4) target bundleno = 1 (0x1), region = 134 }

// kernel: cls_forward.4
= control target key start
LH: loop header
LB: loop body
LE: loop exit
PB: predicated region body
PF: predicated region fallthrough
CT: control target
= control target key end

     0   :  { %s1009_s24 = smov 0   ;;  %s1011_s25 = smov 0   ;;  %s1101_s0 = inlined_call_operand.vmem [shape: f32[2,1,768], index: 0, kind: input, shape index: {}]   ;;  %s1102_s1 = inlined_call_operand.vmem [shape: f32[2,1,768], index: 1, kind: input, shape index: {}]   ;;  %s1103_s2 = inlined_call_operand.vmem [shape: f32[2,4,768], index: 2, kind: input, shape index: {}]   ;;  %s1104_s3 = inlined_call_operand.vmem [shape: f32[2,4,768], index: 3, kind: input, shape index: {}]   ;;  %s1105_s4 = inlined_call_operand.vmem [shape: f32[2,4,768], index: 4, kind: input, shape index: {}]   ;;  %s1106_s5 = inlined_call_operand.vmem [shape: f32[2,4,768], index: 5, kind: input, shape index: {}]   ;;  %s1107_s6 = inlined_call_operand.vmem [shape: f32[2,4,768], index: 6, kind: output, shape index: {0}]   ;;  %s1108_s7 = inlined_call_operand.vmem [shape: f32[2,4,768], index: 7, kind: output, shape index: {1}]  }
   0x1   :  { %s1013_s26 = smov 0   ;;  %s1015_s27 = smov 0  }
   0x2   :  { %s1017_s28 = smov 0  }
   0x3 LB: > { %s27_s29 = sadd.s32 1, %s959_s26  ;;  %s30_s30 = sadd.s32 1, %s963_s27  ;;  %s967_s28 = sphi %s1017_s28, %s18_s28   ;;  %s963_s27 = sphi %s1015_s27, %s1112_s27   ;;  %s959_s26 = sphi %s1013_s26, %s1111_s26   ;;  %s955_s25 = sphi %s1011_s25, %s1110_s25   ;;  %s951_s24 = sphi %s1009_s24, %s1109_s24  }
   0x4   : > { %p28_p0 = scmp.ge.s32.totalorder %s27_s29, 3  ;;  %p867_p1 = scmp.ge.s32.totalorder %s967_s28, 1 }
   0x5   : > { %p346_p2 = scmp.lt.s32.totalorder %s967_s28, 7 }
   0x6   : > { %s1114_s29 = smov (%p28_p0, %s27_s29), 0  ;;  %s1116_s30 = smov (!%p28_p0, %s30_s30), %s963_s27 }
   0x7   : > { %p347_p3 = pnand %p867_p1, %p346_p2  ;;  %p32_p4 = scmp.ge.s32.totalorder %s1116_s30, 2 }
   0x8   : > { %s868_s8 = sshll.u32 (!%p347_p3), %s951_s24, 1  ;;  %p439_p5 = scmp.lt.s32.totalorder (!%p347_p3), %s955_s25, 1 }
   0x9   : > { %s1118_s30 = smov (%p32_p4, %s1116_s30), 0  ;;  %350 = sbr.rel (%p347_p3) target bundleno = 79 (0x4f), region = 44 }
   0xa   : > { %p441_p6 = scmp.lt.s32.totalorder (!%p347_p3), %s868_s8, 5 }
   0xe   : > { %s1120_s25 = smov (!%p439_p5, %s955_s25), 1  ;;  %s1122_s8 = smov (!%p441_p6, %s868_s8), 5  ;;  %vm613_vm8 = vcmask 1043456  }
   0xf   : > { %s884_s9 = smul.u32 6, %s1120_s25 }
  0x11   : > { %s444_s10 = sadd.s32 %s884_s9, %s1122_s8 }
  0x12   : > { %s1039_s11 = sshll.u32 %s444_s10, 2  ;;  %s445_s17 = scalar_lea.vmem %s1101_s0, %s444_s10 }
  0x13   : > { %s464_s14 = scalar_lea.vmem %s1103_s2, %s1039_s11  ;;  %s474_s20 = scalar_lea.vmem %s1104_s3, %s1039_s11  ;;  %v1055_v2 = vld [vmem:[%s445_s17] sm:$0x3] }
  0x14   : > { %v518_v0 = vld [vmem:[%s464_s14] sm:$0xff]  ;;  %s454_s23 = scalar_lea.vmem %s1102_s1, %s444_s10  ;;  %v522_v5 = vmul.f32 %v1055_v2, %v1055_v2  ;;  %s484_s8 = scalar_lea.vmem %s1105_s4, %s1039_s11  ;;  %v578_v30 = vperm.slane %v1055_v2, 1  ;;  %v577_v47 = vperm.slane %v1055_v2, 0 }
  0x15   : > { %v525_v1 = vmul.f32 %v518_v0, %v518_v0  ;;  %v1057_v3 = vld [vmem:[%s454_s23] sm:$0x3]  ;;  %s494_s12 = scalar_lea.vmem %s1106_s5, %s1039_s11  ;;  %s504_s15 = scalar_lea.vmem %s1107_s6, %s1039_s11 }
  0x16   : > { %v519_v4 = vld [vmem:[%s474_s20] sm:$0xff]  ;;  %v523_v6 = vmul.f32 %v1057_v3, %v1057_v3  ;;  %v584_v36 = vperm.slane %v1057_v3, 0  ;;  %v585_v42 = vperm.slane %v1057_v3, 1  ;;  %s514_s18 = scalar_lea.vmem %s1108_s7, %s1039_s11 }
  0x17   : > { %532 = vst [vmem:[#allocation1] ss:$2 sm:$0xff] %v525_v1  ;;  %v539_v7 = vmul.f32 %v519_v4, %v519_v4  ;;  %v520_v13 = vld [vmem:[%s484_s8] sm:$0xff] }
  0x18   : > { %v524_v8 = vadd.f32 %v523_v6, %v522_v5  ;;  %v521_v20 = vld [vmem:[%s494_s12] sm:$0xff] }
  0x1a   : > { %v527_v11 = vperm.slane %v524_v8, 0  ;;  %v528_v12 = vperm.slane %v524_v8, 1 }
  0x1e   : > { %v533_v9 = vld.sshfl [vmem:[#allocation1] sm:$0xff pattern:$0x75316420]  ;;  %v534_v10 = vld.sshfl [vmem:[#allocation1 + $0x8] sm:$0xff pattern:$0x75316420] }
  0x1f   : > { %541 = vst [vmem:[#allocation1] ss:$2 sm:$0xff] %v539_v7  ;;  %v537_v14 = vadd.f32 %v533_v9, %v527_v11  ;;  %v538_v15 = vadd.f32 %v534_v10, %v528_v12 }
  0x26   : > { %v542_v16 = vld.sshfl [vmem:[#allocation1] sm:$0xff pattern:$0x75316420]  ;;  %v543_v17 = vld.sshfl [vmem:[#allocation1 + $0x8] sm:$0xff pattern:$0x75316420] }
  0x27   : > { %593 = vst [vmem:[#allocation1] ss:$2 sm:$0xff] %v520_v13  ;;  %v546_v18 = vadd.f32 %v542_v16, %v537_v14  ;;  %v547_v19 = vadd.f32 %v543_v17, %v538_v15 }
  0x29   : > { %925 = vrcp.f32 %v546_v18  ;;  %v559_v28 = vand.u32 2147483648, %v546_v18  ;;  %v557_v32 = vand.u32 2147483647, %v546_v18  ;;  %v573_v33 = vand.u32 2147483648, %v547_v19 }
  0x2a   : > { %927 = vrcp.f32 %v547_v19  ;;  %v571_v35 = vand.u32 2147483647, %v547_v19  ;;  %vm553_vm2 = vweird.f32 %v546_v18  ;;  %vm567_vm4 = vweird.f32 %v547_v19 }
  0x2b   : > { %v560_v40 = vor.u32 1.1754944e-38, %v559_v28  ;;  %vm558_vm5 = vcmp.eq.f32.partialorder %v557_v32, 8.507059e+37  ;;  %v574_v44 = vor.u32 1.1754944e-38, %v573_v33 }
  0x2c   : > { %vm572_vm7 = vcmp.eq.f32.partialorder %v571_v35, 8.507059e+37 }
  0x2e   : > { %v594_v21 = vld.sshfl [vmem:[#allocation1] sm:$0xff pattern:$0x75316420]  ;;  %v595_v22 = vld.sshfl [vmem:[#allocation1 + $0x8] sm:$0xff pattern:$0x75316420] }
  0x2f   : > { %v926_v23 = vpop.eup %925  ;;  %601 = vst [vmem:[#allocation1] ss:$2 sm:$0xff] %v521_v20 }
  0x30   : > { %v928_v24 = vpop.eup %927  ;;  %v549_v25 = vmul.f32 %v926_v23, %v546_v18  ;;  %vm554_vm0 = vweird.f32 %v926_v23 }
  0x31   : > { %v563_v26 = vmul.f32 %v928_v24, %v547_v19  ;;  %vm568_vm1 = vweird.f32 %v928_v24  ;;  %vm555_vm3 = vmor %vm553_vm2, %vm554_vm0 }
  0x32   : > { %v550_v27 = vsub.f32 1.0, %v549_v25  ;;  %vm569_vm6 = vmor %vm567_vm4, %vm568_vm1 }
  0x33   : > { %v564_v29 = vsub.f32 1.0, %v563_v26 }
  0x34   : > { %v551_v31 = vmul.f32 %v926_v23, %v550_v27 }
  0x35   : > { %v565_v34 = vmul.f32 %v928_v24, %v564_v29 }
  0x36   : > { %v602_v37 = vld.sshfl [vmem:[#allocation1] sm:$0xff pattern:$0x75316420]  ;;  %v603_v38 = vld.sshfl [vmem:[#allocation1 + $0x8] sm:$0xff pattern:$0x75316420]  ;;  %v552_v39 = vadd.f32 %v926_v23, %v551_v31 }
  0x37   : > { %617 = vst [vmem:[#allocation1] ss:$2 sm:$0xff] %v521_v20  ;;  %v566_v41 = vadd.f32 %v928_v24, %v565_v34 }
  0x38   : > { %v556_v43 = vsel %vm555_vm3, %v926_v23, %v552_v39 }
  0x39   : > { %v561_v45 = vsel %vm558_vm5, %v560_v40, %v556_v43  ;;  %v570_v46 = vsel %vm569_vm6, %v928_v24, %v566_v41 }
  0x3a   : > { %v575_v48 = vsel %vm572_vm7, %v574_v44, %v570_v46  ;;  %v588_v49 = vmul.f32 %v584_v36, %v561_v45  ;;  %v581_v53 = vmul.f32 %v577_v47, %v561_v45 }
  0x3b   : > { %v582_v50 = vmul.f32 %v578_v30, %v575_v48  ;;  %v589_v51 = vmul.f32 %v585_v42, %v575_v48 }
  0x3c   : > { %v590_v52 = vsub.f32 0.0, %v588_v49  ;;  %v598_v60 = vmul.f32 %v594_v21, %v581_v53 }
  0x3d   : > { %v591_v54 = vsub.f32 0.0, %v589_v51  ;;  %v599_v57 = vmul.f32 %v595_v22, %v582_v50 }
  0x3e   : > { %v618_v55 = vld.sshfl [vmem:[#allocation1] sm:$0xff pattern:$0x75316420]  ;;  %v619_v56 = vld.sshfl [vmem:[#allocation1 + $0x8] sm:$0xff pattern:$0x75316420]  ;;  %v606_v58 = vmul.f32 %v602_v37, %v590_v52 }
  0x3f   : > { %624 = vst [vmem:[#allocation1] ss:$2 sm:$0xff] %v520_v13  ;;  %v607_v59 = vmul.f32 %v603_v38, %v591_v54  ;;  %v623_v3 = vmul.f32 %v619_v56, %v582_v50  ;;  %v622_v6 = vmul.f32 %v618_v55, %v581_v53 }
  0x40   : > { %v608_v62 = vsub.f32 %v598_v60, %v606_v58 }
  0x41   : > { %v609_v61 = vsub.f32 %v599_v57, %v607_v59 }
  0x43   : > { %v612_v63 = vrot.slane %v609_v61, 4 }
  0x45   : > { %v614_v0 = vsel %vm613_vm8, %v608_v62, %v612_v63 }
  0x46   : > { %616 = vst [vmem:[%s504_s15] sm:$0xff] %v614_v0  ;;  %v625_v1 = vld.sshfl [vmem:[#allocation1] sm:$0xff pattern:$0x75316420]  ;;  %v626_v2 = vld.sshfl [vmem:[#allocation1 + $0x8] sm:$0xff pattern:$0x75316420] }
  0x47   : > { %v629_v4 = vmul.f32 %v625_v1, %v590_v52  ;;  %v630_v5 = vmul.f32 %v626_v2, %v591_v54 }
  0x49   : > { %v632_v7 = vadd.f32 %v630_v5, %v623_v3  ;;  %v631_v8 = vadd.f32 %v629_v4, %v622_v6 }
  0x4b   : > { %v635_v9 = vrot.slane %v632_v7, 4 }
  0x4d   : > { %v636_v10 = vsel %vm613_vm8, %v631_v8, %v635_v9 }
  0x4e   : > { %638 = vst [vmem:[%s514_s18] sm:$0xff] %v636_v10 }
  0x4f PF: > { %s18_s28 = sadd.s32 1, %s967_s28   ;;  %s1109_s24 = smov %s959_s26 }
  0x50   : > { %p15_p7 = scmp.ge.s32.totalorder %s18_s28, 8   ;;  %s1110_s25 = smov %s963_s27 }
  0x51   : > { %s1111_s26 = smov %s1114_s29  ;;  %s1112_s27 = smov %s1118_s30 }
  0x52   :  { %17 = sbr.rel (!%p15_p7) target bundleno = 3 (0x3), region = 101 }

// kernel: cls_forward.5
= control target key start
LH: loop header
LB: loop body
LE: loop exit
PB: predicated region body
PF: predicated region fallthrough
CT: control target
= control target key end

     0   :  { %s454_s12 = smov 0   ;;  %s456_s13 = smov 0   ;;  %s496_s0 = inlined_call_operand.vmem [shape: bf16[2,4,256], index: 0, kind: input, shape index: {}]   ;;  %s497_s1 = inlined_call_operand.vmem [shape: bf16[16,4], index: 1, kind: input, shape index: {}]   ;;  %s498_s2 = inlined_call_operand.vmem [shape: f32[16,1], index: 2, kind: input, shape index: {}]   ;;  %s499_s3 = inlined_call_operand.vmem [shape: f32[2,16,256], index: 3, kind: output, shape index: {}]  }
   0x1   :  { %s458_s14 = smov 0  }
   0x2 LB: > { %s25_s15 = sadd.s32 1, %s427_s13  ;;  %p367_p0 = scmp.ge.s32.totalorder %s431_s14, 1  ;;  %s431_s14 = sphi %s458_s14, %s13_s14   ;;  %s427_s13 = sphi %s456_s13, %s501_s13   ;;  %s423_s12 = sphi %s454_s12, %s500_s12  }
   0x3   : > { %p27_p1 = scmp.ge.s32.totalorder %s25_s15, 2  ;;  %p158_p2 = scmp.lt.s32.totalorder %s431_s14, 3 }
   0x5   : > { %s503_s15 = smov (%p27_p1, %s25_s15), 0  ;;  %p159_p3 = pnand %p367_p0, %p158_p2 }
   0x6   : > { %p191_p4 = scmp.lt.s32.totalorder (!%p159_p3), %s423_s12, 1 }
   0x7   : > { %162 = sbr.rel (%p159_p3) target bundleno = 166 (0xa6), region = 32 }
   0xc   : > { %v214_v0 = vld [vmem:[%s498_s2] sm:$0xff]  ;;  %v433_v1 = vmov 0   ;;  %s505_s12 = smov (!%p191_p4, %s423_s12), 1  ;;  %v215_v3 = vld [vmem:[%s498_s2 + $0x8] sm:$0xff]  ;;  %vm239_vm0 = vcmask 1041408   ;;  %vm235_vm1 = vcmask 31744  }
   0xd   : > { %408 = vset.pattern.permute.xlu0 %v433_v1  ;;  %s380_s18 = sshll.u32 %s505_s12, 2  ;;  %v382_v8 = vld [vmem:[%s497_s1] sm:$0xff]  ;;  %s381_s26 = sshll.u32 %s505_s12, 5 }
   0xe   : > { %218 = vperm.xlu0 %408, %v214_v0   ;;  %s198_s21 = scalar_lea.vmem %s496_s0, %s380_s18  ;;  %s208_s29 = scalar_lea.vmem %s499_s3, %s381_s26 }
   0xf   : > { %v213_v2 = vld [vmem:[%s198_s21] sm:$0xf] }
  0x10   : > { %232 = vst [vmem:[#allocation1] ss:$4 sm:$0xff] %v213_v2 }
  0x16   : > { %223 = vperm.xlu0 %408, %v215_v3  }
  0x17   : > { %v233_v4 = vld.sshfl [vmem:[#allocation1] sm:$0xff pattern:$0x73625140]  ;;  %v234_v5 = vld.sshfl [vmem:[#allocation1 + $0x8] sm:$0xff pattern:$0x73625140] }
  0x18   : > { %v240_v6 = vsel %vm239_vm0, %v233_v4, 0  ;;  %v242_v7 = vsel %vm239_vm0, %v234_v5, 0 }
  0x19   : > { %251 = vmatpush.bf16.msra.mxu0 %v240_v6  ;;  %265 = vmatpush.bf16.msra.mxu1 %v242_v7 }
  0x1c   : > { %376 = vmatmul.msk.bf16.vlgmr.msra.gmra.mxu0 %vm235_vm1, %v382_v8  ;;  %377 = vmatmul.msk.bf16.vlgmr.msra.gmra.mxu1 %vm235_vm1, %v382_v8 }
  0x80   : > { %v219_v9 = vpop.permute.xlu0 %218 }
  0x88   : > { %v224_v14 = vpop.permute.xlu0 %223 }
  0x99   : > { %v253_v10 = vpop.f32.mrf.mxu0  ;;  %v267_v11 = vpop.f32.mrf.mxu1 }
  0x9a   : > { %v254_v12 = vadd.f32 %v253_v10, %v219_v9  ;;  %v268_v13 = vadd.f32 %v267_v11, %v219_v9 }
  0x9c   : > { %272 = vst [vmem:[%s208_s29] sm:$0xff] %v254_v12 }
  0x9d   : > { %273 = vst [vmem:[%s208_s29 + $0x8] sm:$0xff] %v268_v13 }
  0xa1   : > { %v255_v15 = vpop.f32.mrf.mxu0  ;;  %v269_v16 = vpop.f32.mrf.mxu1 }
  0xa2   : > { %v256_v17 = vadd.f32 %v255_v15, %v224_v14  ;;  %v270_v18 = vadd.f32 %v269_v16, %v224_v14 }
  0xa4   : > { %274 = vst [vmem:[%s208_s29 + $0x10] sm:$0xff] %v256_v17 }
  0xa5   : > { %275 = vst [vmem:[%s208_s29 + $0x18] sm:$0xff] %v270_v18 }
  0xa6 PF: > { %s13_s14 = sadd.s32 1, %s431_s14   ;;  %s500_s12 = smov %s427_s13 }
  0xa7   : > { %p10_p5 = scmp.ge.s32.totalorder %s13_s14, 4   ;;  %s501_s13 = smov %s503_s15 }
  0xa9   :  { %12 = sbr.rel (!%p10_p5) target bundleno = 2 (0x2), region = 62 }

</bundles_post_ra>
